<compile_context>
chip_gen: v5e
topology: v5e:2x2
jax: 0.10.0
libtpu: 0.0.40
codegen_flags: <defaults>
</compile_context>

<pallas_src>
import math

import jax
import jax.numpy as jnp
from jax.experimental import pallas as pl
from jax.experimental.pallas import tpu as pltpu

EPS = 1e-5  # PyTorch nn.LayerNorm default eps


def _make_kernel(*, causal_tgt, has_tgt_mask, has_src_mask):
    """Builds the decoder-layer kernel for a given mask configuration."""

    def kernel(*refs):
        it = iter(refs)
        x_ref = next(it)                                   # (Bb, T, D)
        enc_ref = next(it)                                 # (Bb, S, D)
        tgt_mask_ref = next(it) if has_tgt_mask else None  # (T, T) int8 or absent
        src_mask_ref = next(it) if has_src_mask else None  # (T, S) int8 or absent
        (w_qkv_s_ref, b_qkv_s_ref, w_o_s_ref, b_o_s_ref,
         w_q_c_ref, b_q_c_ref, w_kv_c_ref, b_kv_c_ref, w_o_c_ref, b_o_c_ref,
         gamma_ref, beta_ref, w1_ref, b1_ref, w2_ref, b2_ref,
         out_ref) = list(it)

        Bb, T, D = x_ref.shape
        S = enc_ref.shape[1]
        f32, bf16 = jnp.float32, jnp.bfloat16

        # Flatten rows: all projections / layernorms / FFN are row-wise, so a
        # single tall (Bb*T, D) operand keeps the MXU M-dim well filled.
        x2d = x_ref[...].reshape(Bb * T, D).astype(f32)
        enc2d = enc_ref[...].reshape(Bb * S, D).astype(f32)

        gam = gamma_ref[...]   # (3, D)
        bet = beta_ref[...]    # (3, D)

        def layer_norm(h, idx):
            g = gam[idx:idx + 1, :]
            b = bet[idx:idx + 1, :]
            mu = jnp.mean(h, axis=-1, keepdims=True)
            var = jnp.mean(jnp.square(h - mu), axis=-1, keepdims=True)
            return (h - mu) * jax.lax.rsqrt(var + EPS) * g + b

        def matmul(h, w_ref, b_ref):
            # bf16 MXU matmul, f32 accumulation, bias add in f32.
            return jnp.dot(h.astype(bf16), w_ref[...],
                           preferred_element_type=f32) + b_ref[...]

        def softmax_attend(q, k, v, mask_bool):
            # q: (Bb, T, D) bf16; k, v: (Bb, L, D) bf16. The 1/sqrt(D) scale
            # is pre-folded into the Q projection weights (wrapper-side).
            s = jnp.einsum("bqd,bkd->bqk", q, k,
                           preferred_element_type=f32)
            if mask_bool is not None:
                s = jnp.where(mask_bool, s, -1e9)
            s = s - jnp.max(s, axis=-1, keepdims=True)       # f32 softmax
            p = jnp.exp(s)
            p = p * pl.reciprocal(jnp.sum(p, axis=-1, keepdims=True),
                                  approx=True)
            return jnp.einsum("bqk,bkd->bqd", p.astype(bf16), v,
                              preferred_element_type=f32)

        # ---------------- self-attention (fused QKV: one (R,D)x(D,3D) matmul)
        qkv = matmul(x2d, w_qkv_s_ref, b_qkv_s_ref).astype(bf16)  # (Bb*T, 3D)
        q = qkv[:, 0 * D:1 * D].reshape(Bb, T, D)
        k = qkv[:, 1 * D:2 * D].reshape(Bb, T, D)
        v = qkv[:, 2 * D:3 * D].reshape(Bb, T, D)

        if causal_tgt:
            row = jax.lax.broadcasted_iota(jnp.int32, (T, T), 0)
            col = jax.lax.broadcasted_iota(jnp.int32, (T, T), 1)
            self_mask = (row >= col)[None, :, :]
        elif has_tgt_mask:
            self_mask = (tgt_mask_ref[...] != 0)[None, :, :]
        else:
            self_mask = None

        o = softmax_attend(q, k, v, self_mask).reshape(Bb * T, D)
        x2d = layer_norm(x2d + matmul(o, w_o_s_ref, b_o_s_ref), 0)

        # ---------------- cross-attention (fused KV projection of encoder out)
        q = matmul(x2d, w_q_c_ref, b_q_c_ref).astype(bf16).reshape(Bb, T, D)
        kv = matmul(enc2d, w_kv_c_ref, b_kv_c_ref).astype(bf16)   # (Bb*S, 2D)
        k = kv[:, 0 * D:1 * D].reshape(Bb, S, D)
        v = kv[:, 1 * D:2 * D].reshape(Bb, S, D)
        cross_mask = ((src_mask_ref[...] != 0)[None, :, :]
                      if has_src_mask else None)
        o = softmax_attend(q, k, v, cross_mask).reshape(Bb * T, D)
        x2d = layer_norm(x2d + matmul(o, w_o_c_ref, b_o_c_ref), 1)

        # ---------------- feed-forward (h kept bf16: largest temporary, (R,F))
        h = jnp.maximum(matmul(x2d, w1_ref, b1_ref), 0.0).astype(bf16)
        x2d = layer_norm(x2d + matmul(h, w2_ref, b2_ref), 2)

        out_ref[...] = x2d.reshape(Bb, T, D).astype(out_ref.dtype)

    return kernel


def decoder_layer(params, x, encoder_output, src_mask=None, tgt_mask=None, *,
                  causal_tgt=False, block_b=None, out_dtype=None,
                  vmem_limit_bytes=48 * 1024 * 1024):
    """DecoderLayer forward. If causal_tgt, the causal target mask is
    generated inside the kernel (tgt_mask must then be None)."""
    B, T, D = x.shape
    S = encoder_output.shape[1]
    F = params["w1"].shape[1]
    assert not (causal_tgt and tgt_mask is not None)
    out_dtype = x.dtype if out_dtype is None else out_dtype

    if block_b is None:
        # Multi-step grid: >=2 steps shards across v7x's two TCs via
        # dimension_semantics=("parallel",) and overlaps DMA with compute on
        # all chips; per-step overhead (~0.35 us) is negligible.
        target_steps = min(B, 4)
        block_b = 1
        for bb in range(B, 0, -1):
            if B % bb == 0 and B // bb >= target_steps:
                block_b = bb
                break
    assert B % block_b == 0
    grid = (B // block_b,)

    f32, bf16 = jnp.float32, jnp.bfloat16
    sa, ca = params["self"], params["cross"]
    inv_sqrt_d = 1.0 / math.sqrt(D)

    # Fuse projections, fold the softmax scale into the Q projection, and cast
    # weights to bf16 (biases / LN params stay f32).
    w_qkv_s = jnp.concatenate(
        [sa["wq"] * inv_sqrt_d, sa["wk"], sa["wv"]], axis=1).astype(bf16)
    b_qkv_s = jnp.concatenate(
        [sa["bq"] * inv_sqrt_d, sa["bk"], sa["bv"]]).reshape(1, 3 * D).astype(f32)
    w_o_s = sa["wo"].astype(bf16)
    b_o_s = sa["bo"].reshape(1, D).astype(f32)
    w_q_c = (ca["wq"] * inv_sqrt_d).astype(bf16)
    b_q_c = (ca["bq"] * inv_sqrt_d).reshape(1, D).astype(f32)
    w_kv_c = jnp.concatenate([ca["wk"], ca["wv"]], axis=1).astype(bf16)
    b_kv_c = jnp.concatenate([ca["bk"], ca["bv"]]).reshape(1, 2 * D).astype(f32)
    w_o_c = ca["wo"].astype(bf16)
    b_o_c = ca["bo"].reshape(1, D).astype(f32)
    w1 = params["w1"].astype(bf16)
    b1 = params["b1"].reshape(1, F).astype(f32)
    w2 = params["w2"].astype(bf16)
    b2 = params["b2"].reshape(1, D).astype(f32)
    gamma = params["gamma"].astype(f32)
    beta = params["beta"].astype(f32)

    def batched(shape):
        return pl.BlockSpec(shape, lambda b: (b, 0, 0))

    def const(shape):
        # Constant-index block: fetched once, single-buffered (no wasted VMEM
        # on a second buffer that would hold identical data).
        nd = len(shape)
        idx = lambda b, _n=nd: (0,) * _n
        try:
            return pl.BlockSpec(shape, idx, pipeline_mode=pl.Buffered(1))
        except TypeError:  # older jax without pipeline_mode kwarg
            return pl.BlockSpec(shape, idx)

    in_specs = [batched((block_b, T, D)), batched((block_b, S, D))]
    inputs = [x, encoder_output]

    has_tgt_mask = tgt_mask is not None
    has_src_mask = src_mask is not None
    if has_tgt_mask:   # masks are shared across the batch, shape (T, T), int8
        inputs.append((jnp.asarray(tgt_mask) != 0).astype(jnp.int8).reshape(T, T))
        in_specs.append(const((T, T)))
    if has_src_mask:   # shape (T, S), int8
        inputs.append((jnp.asarray(src_mask) != 0).astype(jnp.int8).reshape(T, S))
        in_specs.append(const((T, S)))

    consts = [w_qkv_s, b_qkv_s, w_o_s, b_o_s,
              w_q_c, b_q_c, w_kv_c, b_kv_c, w_o_c, b_o_c,
              gamma, beta, w1, b1, w2, b2]
    inputs += consts
    in_specs += [const(c.shape) for c in consts]

    kernel = _make_kernel(causal_tgt=causal_tgt, has_tgt_mask=has_tgt_mask,
                          has_src_mask=has_src_mask)

    return pl.pallas_call(
        kernel,
        out_shape=jax.ShapeDtypeStruct((B, T, D), out_dtype),
        grid_spec=pltpu.PrefetchScalarGridSpec(
            num_scalar_prefetch=0,
            grid=grid,
            in_specs=in_specs,
            out_specs=pl.BlockSpec((block_b, T, D), lambda b: (b, 0, 0)),
        ),
        compiler_params=pltpu.CompilerParams(
            dimension_semantics=("parallel",),
            vmem_limit_bytes=vmem_limit_bytes,
        ),
    )(*inputs)


# ----------------------- parameter init & pure-JAX reference -----------------
def init_params(key, D, F):
    ks = iter(jax.random.split(key, 20))

    def w(din, dout):
        return 0.05 * jax.random.normal(next(ks), (din, dout), jnp.float32)

    def b(dout):
        return 0.05 * jax.random.normal(next(ks), (dout,), jnp.float32)

    def attn():
        return {"wq": w(D, D), "bq": b(D), "wk": w(D, D), "bk": b(D),
                "wv": w(D, D), "bv": b(D), "wo": w(D, D), "bo": b(D)}

    return {
        "self": attn(),
        "cross": attn(),
        "gamma": jnp.ones((3, D), jnp.float32),
        "beta": jnp.zeros((3, D), jnp.float32),
        "w1": w(D, F), "b1": b(F),
        "w2": w(F, D), "b2": b(D),
    }


def _ref(x, enc, src_mask, tgt_mask, p):
    d = x.shape[-1]

    def ln(h, g, b):
        mu = h.mean(-1, keepdims=True)
        var = ((h - mu) ** 2).mean(-1, keepdims=True)
        return (h - mu) / jnp.sqrt(var + EPS) * g + b

    def attn(q_in, kv_in, a, mask):
        q = q_in @ a["wq"] + a["bq"]
        k = kv_in @ a["wk"] + a["bk"]
        v = kv_in @ a["wv"] + a["bv"]
        s = jnp.einsum("btd,bsd->bts", q, k) / math.sqrt(d)
        if mask is not None:
            s = jnp.where(mask == 0, -1e9, s)
        w = jax.nn.softmax(s, axis=-1)
        return jnp.einsum("bts,bsd->btd", w, v) @ a["wo"] + a["bo"]

    x = ln(x + attn(x, x, p["self"], tgt_mask), p["gamma"][0], p["beta"][0])
    x = ln(x + attn(x, enc, p["cross"], src_mask), p["gamma"][1], p["beta"][1])
    h = jax.nn.relu(x @ p["w1"] + p["b1"])
    x = ln(x + h @ p["w2"] + p["b2"], p["gamma"][2], p["beta"][2])
    return x


if __name__ == "__main__":
    # Lane-dense small shapes: D, F multiples of 128; T, S multiples of 8.
    B, T, S, D, F = 2, 16, 24, 128, 256

    key = jax.random.PRNGKey(0)
    kp, kx, ke = jax.random.split(key, 3)
    params = init_params(kp, D, F)
    x = jax.random.normal(kx, (B, T, D), jnp.float32)
    enc = jax.random.normal(ke, (B, S, D), jnp.float32)

    causal = jnp.tril(jnp.ones((T, T), jnp.float32))
    ref = _ref(x, enc, None, causal, params)

    # Optimized path: causal tgt mask generated in-kernel, no src mask DMA.
    out = decoder_layer(params, x, enc, src_mask=None, tgt_mask=None,
                        causal_tgt=True)
    out = jax.block_until_ready(out)
    assert out.shape == (B, T, D)
    assert jnp.allclose(out, ref, atol=5e-2, rtol=5e-2), (
        f"mismatch (causal path): max abs err {jnp.max(jnp.abs(out - ref))}")

    # Explicit-mask path (matches the PyTorch forward signature with masks).
    out2 = decoder_layer(params, x, enc,
                         src_mask=jnp.ones((T, S), jnp.float32),
                         tgt_mask=causal, causal_tgt=False)
    out2 = jax.block_until_ready(out2)
    assert jnp.allclose(out2, ref, atol=5e-2, rtol=5e-2), (
        f"mismatch (explicit-mask path): "
        f"max abs err {jnp.max(jnp.abs(out2 - ref))}")

    print("KERNEL_OK")
</pallas_src>

<mosaic_0001>
module attributes {stable_mosaic.version = 11 : i64} {
  func.func @kernel(%arg0: i32, %arg1: memref<1x16x128xf32, #tpu.memory_space<vmem>>, %arg2: memref<1x24x128xf32, #tpu.memory_space<vmem>>, %arg3: memref<128x384xbf16, #tpu.memory_space<vmem>>, %arg4: memref<1x384xf32, #tpu.memory_space<vmem>>, %arg5: memref<128x128xbf16, #tpu.memory_space<vmem>>, %arg6: memref<1x128xf32, #tpu.memory_space<vmem>>, %arg7: memref<128x128xbf16, #tpu.memory_space<vmem>>, %arg8: memref<1x128xf32, #tpu.memory_space<vmem>>, %arg9: memref<128x256xbf16, #tpu.memory_space<vmem>>, %arg10: memref<1x256xf32, #tpu.memory_space<vmem>>, %arg11: memref<128x128xbf16, #tpu.memory_space<vmem>>, %arg12: memref<1x128xf32, #tpu.memory_space<vmem>>, %arg13: memref<3x128xf32, #tpu.memory_space<vmem>>, %arg14: memref<3x128xf32, #tpu.memory_space<vmem>>, %arg15: memref<128x256xbf16, #tpu.memory_space<vmem>>, %arg16: memref<1x256xf32, #tpu.memory_space<vmem>>, %arg17: memref<256x128xbf16, #tpu.memory_space<vmem>>, %arg18: memref<1x128xf32, #tpu.memory_space<vmem>>, %arg19: memref<1x16x128xf32, #tpu.memory_space<vmem>>) attributes {dimension_semantics = [#tpu.dimension_semantics<parallel>], iteration_bounds = array<i64: 2>, scalar_prefetch = 0 : i64, scratch_operands = 0 : i64, tpu.core_type = #tpu.core_type<tc>, window_params = [{transform_indices = @transform_0, window_bounds = array<i64: 1, 16, 128>}, {transform_indices = @transform_1, window_bounds = array<i64: 1, 24, 128>}, {pipeline_mode = #tpu.pipeline_mode<synchronous>, transform_indices = @transform_2, window_bounds = array<i64: 128, 384>}, {pipeline_mode = #tpu.pipeline_mode<synchronous>, transform_indices = @transform_3, window_bounds = array<i64: 1, 384>}, {pipeline_mode = #tpu.pipeline_mode<synchronous>, transform_indices = @transform_4, window_bounds = array<i64: 128, 128>}, {pipeline_mode = #tpu.pipeline_mode<synchronous>, transform_indices = @transform_5, window_bounds = array<i64: 1, 128>}, {pipeline_mode = #tpu.pipeline_mode<synchronous>, transform_indices = @transform_6, window_bounds = array<i64: 128, 128>}, {pipeline_mode = #tpu.pipeline_mode<synchronous>, transform_indices = @transform_7, window_bounds = array<i64: 1, 128>}, {pipeline_mode = #tpu.pipeline_mode<synchronous>, transform_indices = @transform_8, window_bounds = array<i64: 128, 256>}, {pipeline_mode = #tpu.pipeline_mode<synchronous>, transform_indices = @transform_9, window_bounds = array<i64: 1, 256>}, {pipeline_mode = #tpu.pipeline_mode<synchronous>, transform_indices = @transform_10, window_bounds = array<i64: 128, 128>}, {pipeline_mode = #tpu.pipeline_mode<synchronous>, transform_indices = @transform_11, window_bounds = array<i64: 1, 128>}, {pipeline_mode = #tpu.pipeline_mode<synchronous>, transform_indices = @transform_12, window_bounds = array<i64: 3, 128>}, {pipeline_mode = #tpu.pipeline_mode<synchronous>, transform_indices = @transform_13, window_bounds = array<i64: 3, 128>}, {pipeline_mode = #tpu.pipeline_mode<synchronous>, transform_indices = @transform_14, window_bounds = array<i64: 128, 256>}, {pipeline_mode = #tpu.pipeline_mode<synchronous>, transform_indices = @transform_15, window_bounds = array<i64: 1, 256>}, {pipeline_mode = #tpu.pipeline_mode<synchronous>, transform_indices = @transform_16, window_bounds = array<i64: 256, 128>}, {pipeline_mode = #tpu.pipeline_mode<synchronous>, transform_indices = @transform_17, window_bounds = array<i64: 1, 128>}, {transform_indices = @transform_18, window_bounds = array<i64: 1, 16, 128>}]} {
    %c0 = arith.constant 0 : index
    %c0_0 = arith.constant 0 : index
    %c0_1 = arith.constant 0 : index
    %0 = vector.load %arg1[%c0, %c0_0, %c0_1] : memref<1x16x128xf32, #tpu.memory_space<vmem>>, vector<1x16x128xf32>
    %1 = vector.shape_cast %0 : vector<1x16x128xf32> to vector<16x128xf32>
    %c0_2 = arith.constant 0 : index
    %c0_3 = arith.constant 0 : index
    %c0_4 = arith.constant 0 : index
    %2 = vector.load %arg2[%c0_2, %c0_3, %c0_4] : memref<1x24x128xf32, #tpu.memory_space<vmem>>, vector<1x24x128xf32>
    %3 = vector.shape_cast %2 : vector<1x24x128xf32> to vector<24x128xf32>
    %c0_5 = arith.constant 0 : index
    %c0_6 = arith.constant 0 : index
    %4 = vector.load %arg13[%c0_5, %c0_6] : memref<3x128xf32, #tpu.memory_space<vmem>>, vector<3x128xf32>
    %c0_7 = arith.constant 0 : index
    %c0_8 = arith.constant 0 : index
    %5 = vector.load %arg14[%c0_7, %c0_8] : memref<3x128xf32, #tpu.memory_space<vmem>>, vector<3x128xf32>
    %6 = arith.truncf %1 : vector<16x128xf32> to vector<16x128xbf16>
    %c0_9 = arith.constant 0 : index
    %c0_10 = arith.constant 0 : index
    %7 = vector.load %arg3[%c0_9, %c0_10] : memref<128x384xbf16, #tpu.memory_space<vmem>>, vector<128x384xbf16>
    %cst = arith.constant dense<0.000000e+00> : vector<16x384xf32>
    %8 = tpu.matmul %6, %7, %cst {dimension_numbers = #tpu.dot_dimension_numbers<[1], [0], [0], [1], [0, 0, 1, 1], [], []>} : vector<16x128xbf16>, vector<128x384xbf16>, vector<16x384xf32> -> vector<16x384xf32>
    %c0_11 = arith.constant 0 : index
    %c0_12 = arith.constant 0 : index
    %9 = vector.load %arg4[%c0_11, %c0_12] : memref<1x384xf32, #tpu.memory_space<vmem>>, vector<1x384xf32>
    %10 = vector.broadcast %9 : vector<1x384xf32> to vector<16x384xf32>
    %11 = arith.addf %8, %10 : vector<16x384xf32>
    %12 = arith.truncf %11 : vector<16x384xf32> to vector<16x384xbf16>
    %13 = vector.extract_strided_slice %12 {offsets = [0, 0], sizes = [16, 128], strides = [1, 1]} : vector<16x384xbf16> to vector<16x128xbf16>
    %14 = vector.shape_cast %13 : vector<16x128xbf16> to vector<1x16x128xbf16>
    %15 = vector.extract_strided_slice %12 {offsets = [0, 128], sizes = [16, 128], strides = [1, 1]} : vector<16x384xbf16> to vector<16x128xbf16>
    %16 = vector.shape_cast %15 : vector<16x128xbf16> to vector<1x16x128xbf16>
    %17 = vector.extract_strided_slice %12 {offsets = [0, 256], sizes = [16, 128], strides = [1, 1]} : vector<16x384xbf16> to vector<16x128xbf16>
    %18 = vector.shape_cast %17 : vector<16x128xbf16> to vector<1x16x128xbf16>
    %19 = tpu.iota {dimensions = array<i32: 0>} : vector<16x16xi32>
    %20 = tpu.iota {dimensions = array<i32: 1>} : vector<16x16xi32>
    %21 = arith.cmpi sge, %19, %20 : vector<16x16xi32>
    %22 = vector.shape_cast %21 : vector<16x16xi1> to vector<1x16x16xi1>
    "tpu.trace_start"() <{level = 10 : i32, message = "bqd,bkd->bqk"}> : () -> ()
    %cst_13 = arith.constant dense<0.000000e+00> : vector<1x16x16xf32>
    %23 = tpu.matmul %14, %16, %cst_13 {dimension_numbers = #tpu.dot_dimension_numbers<[2], [2], [1], [1], [0, 0, 0, 1, 1, 1], [0], [0]>} : vector<1x16x128xbf16>, vector<1x16x128xbf16>, vector<1x16x16xf32> -> vector<1x16x16xf32>
    %cst_14 = arith.constant -1.000000e+09 : f32
    "tpu.trace_stop"() : () -> ()
    %24 = vector.broadcast %cst_14 : f32 to vector<1x16x16xf32>
    %25 = arith.select %22, %23, %24 : vector<1x16x16xi1>, vector<1x16x16xf32>
    %cst_15 = arith.constant dense<0xFF800000> : vector<1x16xf32>
    %26 = vector.multi_reduction <maximumf>, %25, %cst_15 [2] : vector<1x16x16xf32> to vector<1x16xf32>
    %27 = vector.shape_cast %26 : vector<1x16xf32> to vector<1x16x1xf32>
    %28 = vector.broadcast %27 : vector<1x16x1xf32> to vector<1x16x16xf32>
    %29 = arith.subf %25, %28 : vector<1x16x16xf32>
    %30 = math.exp %29 : vector<1x16x16xf32>
    %cst_16 = arith.constant dense<0.000000e+00> : vector<1x16xf32>
    %31 = vector.multi_reduction <add>, %30, %cst_16 [2] : vector<1x16x16xf32> to vector<1x16xf32>
    %32 = vector.shape_cast %31 : vector<1x16xf32> to vector<1x16x1xf32>
    %33 = tpu.reciprocal %32 {approx = true} : vector<1x16x1xf32> -> vector<1x16x1xf32>
    %34 = vector.broadcast %33 : vector<1x16x1xf32> to vector<1x16x16xf32>
    %35 = arith.mulf %30, %34 : vector<1x16x16xf32>
    %36 = arith.truncf %35 : vector<1x16x16xf32> to vector<1x16x16xbf16>
    "tpu.trace_start"() <{level = 10 : i32, message = "bqk,bkd->bqd"}> : () -> ()
    %cst_17 = arith.constant dense<0.000000e+00> : vector<1x16x128xf32>
    %37 = tpu.matmul %36, %18, %cst_17 {dimension_numbers = #tpu.dot_dimension_numbers<[2], [1], [1], [2], [0, 0, 0, 1, 1, 2], [0], [0]>} : vector<1x16x16xbf16>, vector<1x16x128xbf16>, vector<1x16x128xf32> -> vector<1x16x128xf32>
    "tpu.trace_stop"() : () -> ()
    %38 = vector.shape_cast %37 : vector<1x16x128xf32> to vector<16x128xf32>
    %39 = arith.truncf %38 : vector<16x128xf32> to vector<16x128xbf16>
    %c0_18 = arith.constant 0 : index
    %c0_19 = arith.constant 0 : index
    %40 = vector.load %arg5[%c0_18, %c0_19] : memref<128x128xbf16, #tpu.memory_space<vmem>>, vector<128x128xbf16>
    %cst_20 = arith.constant dense<0.000000e+00> : vector<16x128xf32>
    %41 = tpu.matmul %39, %40, %cst_20 {dimension_numbers = #tpu.dot_dimension_numbers<[1], [0], [0], [1], [0, 0, 1, 1], [], []>} : vector<16x128xbf16>, vector<128x128xbf16>, vector<16x128xf32> -> vector<16x128xf32>
    %c0_21 = arith.constant 0 : index
    %c0_22 = arith.constant 0 : index
    %42 = vector.load %arg6[%c0_21, %c0_22] : memref<1x128xf32, #tpu.memory_space<vmem>>, vector<1x128xf32>
    %43 = vector.broadcast %42 : vector<1x128xf32> to vector<16x128xf32>
    %44 = arith.addf %41, %43 : vector<16x128xf32>
    %45 = arith.addf %1, %44 : vector<16x128xf32>
    %46 = vector.extract_strided_slice %4 {offsets = [0, 0], sizes = [1, 128], strides = [1, 1]} : vector<3x128xf32> to vector<1x128xf32>
    %47 = vector.extract_strided_slice %5 {offsets = [0, 0], sizes = [1, 128], strides = [1, 1]} : vector<3x128xf32> to vector<1x128xf32>
    %cst_23 = arith.constant dense<0.000000e+00> : vector<16xf32>
    %48 = vector.multi_reduction <add>, %45, %cst_23 [1] : vector<16x128xf32> to vector<16xf32>
    %49 = vector.shape_cast %48 : vector<16xf32> to vector<16x1xf32>
    %cst_24 = arith.constant 1.280000e+02 : f32
    %50 = vector.broadcast %cst_24 : f32 to vector<16x1xf32>
    %51 = arith.divf %49, %50 : vector<16x1xf32>
    %52 = vector.broadcast %51 : vector<16x1xf32> to vector<16x128xf32>
    %53 = arith.subf %45, %52 : vector<16x128xf32>
    %54 = arith.mulf %53, %53 : vector<16x128xf32>
    %cst_25 = arith.constant dense<0.000000e+00> : vector<16xf32>
    %55 = vector.multi_reduction <add>, %54, %cst_25 [1] : vector<16x128xf32> to vector<16xf32>
    %56 = vector.shape_cast %55 : vector<16xf32> to vector<16x1xf32>
    %cst_26 = arith.constant 1.280000e+02 : f32
    %57 = vector.broadcast %cst_26 : f32 to vector<16x1xf32>
    %58 = arith.divf %56, %57 : vector<16x1xf32>
    %59 = vector.broadcast %51 : vector<16x1xf32> to vector<16x128xf32>
    %60 = arith.subf %45, %59 : vector<16x128xf32>
    %cst_27 = arith.constant 9.99999974E-6 : f32
    %61 = vector.broadcast %cst_27 : f32 to vector<16x1xf32>
    %62 = arith.addf %58, %61 : vector<16x1xf32>
    %63 = math.rsqrt %62 : vector<16x1xf32>
    %64 = vector.broadcast %63 : vector<16x1xf32> to vector<16x128xf32>
    %65 = arith.mulf %60, %64 : vector<16x128xf32>
    %66 = vector.broadcast %46 : vector<1x128xf32> to vector<16x128xf32>
    %67 = arith.mulf %65, %66 : vector<16x128xf32>
    %68 = vector.broadcast %47 : vector<1x128xf32> to vector<16x128xf32>
    %69 = arith.addf %67, %68 : vector<16x128xf32>
    %70 = arith.truncf %69 : vector<16x128xf32> to vector<16x128xbf16>
    %c0_28 = arith.constant 0 : index
    %c0_29 = arith.constant 0 : index
    %71 = vector.load %arg7[%c0_28, %c0_29] : memref<128x128xbf16, #tpu.memory_space<vmem>>, vector<128x128xbf16>
    %cst_30 = arith.constant dense<0.000000e+00> : vector<16x128xf32>
    %72 = tpu.matmul %70, %71, %cst_30 {dimension_numbers = #tpu.dot_dimension_numbers<[1], [0], [0], [1], [0, 0, 1, 1], [], []>} : vector<16x128xbf16>, vector<128x128xbf16>, vector<16x128xf32> -> vector<16x128xf32>
    %c0_31 = arith.constant 0 : index
    %c0_32 = arith.constant 0 : index
    %73 = vector.load %arg8[%c0_31, %c0_32] : memref<1x128xf32, #tpu.memory_space<vmem>>, vector<1x128xf32>
    %74 = vector.broadcast %73 : vector<1x128xf32> to vector<16x128xf32>
    %75 = arith.addf %72, %74 : vector<16x128xf32>
    %76 = arith.truncf %75 : vector<16x128xf32> to vector<16x128xbf16>
    %77 = vector.shape_cast %76 : vector<16x128xbf16> to vector<1x16x128xbf16>
    %78 = arith.truncf %3 : vector<24x128xf32> to vector<24x128xbf16>
    %c0_33 = arith.constant 0 : index
    %c0_34 = arith.constant 0 : index
    %79 = vector.load %arg9[%c0_33, %c0_34] : memref<128x256xbf16, #tpu.memory_space<vmem>>, vector<128x256xbf16>
    %cst_35 = arith.constant dense<0.000000e+00> : vector<24x256xf32>
    %80 = tpu.matmul %78, %79, %cst_35 {dimension_numbers = #tpu.dot_dimension_numbers<[1], [0], [0], [1], [0, 0, 1, 1], [], []>} : vector<24x128xbf16>, vector<128x256xbf16>, vector<24x256xf32> -> vector<24x256xf32>
    %c0_36 = arith.constant 0 : index
    %c0_37 = arith.constant 0 : index
    %81 = vector.load %arg10[%c0_36, %c0_37] : memref<1x256xf32, #tpu.memory_space<vmem>>, vector<1x256xf32>
    %82 = vector.broadcast %81 : vector<1x256xf32> to vector<24x256xf32>
    %83 = arith.addf %80, %82 : vector<24x256xf32>
    %84 = arith.truncf %83 : vector<24x256xf32> to vector<24x256xbf16>
    %85 = vector.extract_strided_slice %84 {offsets = [0, 0], sizes = [24, 128], strides = [1, 1]} : vector<24x256xbf16> to vector<24x128xbf16>
    %86 = vector.shape_cast %85 : vector<24x128xbf16> to vector<1x24x128xbf16>
    %87 = vector.extract_strided_slice %84 {offsets = [0, 128], sizes = [24, 128], strides = [1, 1]} : vector<24x256xbf16> to vector<24x128xbf16>
    %88 = vector.shape_cast %87 : vector<24x128xbf16> to vector<1x24x128xbf16>
    "tpu.trace_start"() <{level = 10 : i32, message = "bqd,bkd->bqk"}> : () -> ()
    %cst_38 = arith.constant dense<0.000000e+00> : vector<1x16x24xf32>
    %89 = tpu.matmul %77, %86, %cst_38 {dimension_numbers = #tpu.dot_dimension_numbers<[2], [2], [1], [1], [0, 0, 0, 1, 1, 1], [0], [0]>} : vector<1x16x128xbf16>, vector<1x24x128xbf16>, vector<1x16x24xf32> -> vector<1x16x24xf32>
    "tpu.trace_stop"() : () -> ()
    %cst_39 = arith.constant dense<0xFF800000> : vector<1x16xf32>
    %90 = vector.multi_reduction <maximumf>, %89, %cst_39 [2] : vector<1x16x24xf32> to vector<1x16xf32>
    %91 = vector.shape_cast %90 : vector<1x16xf32> to vector<1x16x1xf32>
    %92 = vector.broadcast %91 : vector<1x16x1xf32> to vector<1x16x24xf32>
    %93 = arith.subf %89, %92 : vector<1x16x24xf32>
    %94 = math.exp %93 : vector<1x16x24xf32>
    %cst_40 = arith.constant dense<0.000000e+00> : vector<1x16xf32>
    %95 = vector.multi_reduction <add>, %94, %cst_40 [2] : vector<1x16x24xf32> to vector<1x16xf32>
    %96 = vector.shape_cast %95 : vector<1x16xf32> to vector<1x16x1xf32>
    %97 = tpu.reciprocal %96 {approx = true} : vector<1x16x1xf32> -> vector<1x16x1xf32>
    %98 = vector.broadcast %97 : vector<1x16x1xf32> to vector<1x16x24xf32>
    %99 = arith.mulf %94, %98 : vector<1x16x24xf32>
    %100 = arith.truncf %99 : vector<1x16x24xf32> to vector<1x16x24xbf16>
    "tpu.trace_start"() <{level = 10 : i32, message = "bqk,bkd->bqd"}> : () -> ()
    %cst_41 = arith.constant dense<0.000000e+00> : vector<1x16x128xf32>
    %101 = tpu.matmul %100, %88, %cst_41 {dimension_numbers = #tpu.dot_dimension_numbers<[2], [1], [1], [2], [0, 0, 0, 1, 1, 2], [0], [0]>} : vector<1x16x24xbf16>, vector<1x24x128xbf16>, vector<1x16x128xf32> -> vector<1x16x128xf32>
    "tpu.trace_stop"() : () -> ()
    %102 = vector.shape_cast %101 : vector<1x16x128xf32> to vector<16x128xf32>
    %103 = arith.truncf %102 : vector<16x128xf32> to vector<16x128xbf16>
    %c0_42 = arith.constant 0 : index
    %c0_43 = arith.constant 0 : index
    %104 = vector.load %arg11[%c0_42, %c0_43] : memref<128x128xbf16, #tpu.memory_space<vmem>>, vector<128x128xbf16>
    %cst_44 = arith.constant dense<0.000000e+00> : vector<16x128xf32>
    %105 = tpu.matmul %103, %104, %cst_44 {dimension_numbers = #tpu.dot_dimension_numbers<[1], [0], [0], [1], [0, 0, 1, 1], [], []>} : vector<16x128xbf16>, vector<128x128xbf16>, vector<16x128xf32> -> vector<16x128xf32>
    %c0_45 = arith.constant 0 : index
    %c0_46 = arith.constant 0 : index
    %106 = vector.load %arg12[%c0_45, %c0_46] : memref<1x128xf32, #tpu.memory_space<vmem>>, vector<1x128xf32>
    %107 = vector.broadcast %106 : vector<1x128xf32> to vector<16x128xf32>
    %108 = arith.addf %105, %107 : vector<16x128xf32>
    %109 = arith.addf %69, %108 : vector<16x128xf32>
    %110 = vector.extract_strided_slice %4 {offsets = [1, 0], sizes = [1, 128], strides = [1, 1]} : vector<3x128xf32> to vector<1x128xf32>
    %111 = vector.extract_strided_slice %5 {offsets = [1, 0], sizes = [1, 128], strides = [1, 1]} : vector<3x128xf32> to vector<1x128xf32>
    %cst_47 = arith.constant dense<0.000000e+00> : vector<16xf32>
    %112 = vector.multi_reduction <add>, %109, %cst_47 [1] : vector<16x128xf32> to vector<16xf32>
    %113 = vector.shape_cast %112 : vector<16xf32> to vector<16x1xf32>
    %cst_48 = arith.constant 1.280000e+02 : f32
    %114 = vector.broadcast %cst_48 : f32 to vector<16x1xf32>
    %115 = arith.divf %113, %114 : vector<16x1xf32>
    %116 = vector.broadcast %115 : vector<16x1xf32> to vector<16x128xf32>
    %117 = arith.subf %109, %116 : vector<16x128xf32>
    %118 = arith.mulf %117, %117 : vector<16x128xf32>
    %cst_49 = arith.constant dense<0.000000e+00> : vector<16xf32>
    %119 = vector.multi_reduction <add>, %118, %cst_49 [1] : vector<16x128xf32> to vector<16xf32>
    %120 = vector.shape_cast %119 : vector<16xf32> to vector<16x1xf32>
    %cst_50 = arith.constant 1.280000e+02 : f32
    %121 = vector.broadcast %cst_50 : f32 to vector<16x1xf32>
    %122 = arith.divf %120, %121 : vector<16x1xf32>
    %123 = vector.broadcast %115 : vector<16x1xf32> to vector<16x128xf32>
    %124 = arith.subf %109, %123 : vector<16x128xf32>
    %cst_51 = arith.constant 9.99999974E-6 : f32
    %125 = vector.broadcast %cst_51 : f32 to vector<16x1xf32>
    %126 = arith.addf %122, %125 : vector<16x1xf32>
    %127 = math.rsqrt %126 : vector<16x1xf32>
    %128 = vector.broadcast %127 : vector<16x1xf32> to vector<16x128xf32>
    %129 = arith.mulf %124, %128 : vector<16x128xf32>
    %130 = vector.broadcast %110 : vector<1x128xf32> to vector<16x128xf32>
    %131 = arith.mulf %129, %130 : vector<16x128xf32>
    %132 = vector.broadcast %111 : vector<1x128xf32> to vector<16x128xf32>
    %133 = arith.addf %131, %132 : vector<16x128xf32>
    %134 = arith.truncf %133 : vector<16x128xf32> to vector<16x128xbf16>
    %c0_52 = arith.constant 0 : index
    %c0_53 = arith.constant 0 : index
    %135 = vector.load %arg15[%c0_52, %c0_53] : memref<128x256xbf16, #tpu.memory_space<vmem>>, vector<128x256xbf16>
    %cst_54 = arith.constant dense<0.000000e+00> : vector<16x256xf32>
    %136 = tpu.matmul %134, %135, %cst_54 {dimension_numbers = #tpu.dot_dimension_numbers<[1], [0], [0], [1], [0, 0, 1, 1], [], []>} : vector<16x128xbf16>, vector<128x256xbf16>, vector<16x256xf32> -> vector<16x256xf32>
    %c0_55 = arith.constant 0 : index
    %c0_56 = arith.constant 0 : index
    %137 = vector.load %arg16[%c0_55, %c0_56] : memref<1x256xf32, #tpu.memory_space<vmem>>, vector<1x256xf32>
    %138 = vector.broadcast %137 : vector<1x256xf32> to vector<16x256xf32>
    %139 = arith.addf %136, %138 : vector<16x256xf32>
    %cst_57 = arith.constant 0.000000e+00 : f32
    %140 = vector.broadcast %cst_57 : f32 to vector<16x256xf32>
    %141 = arith.maximumf %139, %140 : vector<16x256xf32>
    %142 = arith.truncf %141 : vector<16x256xf32> to vector<16x256xbf16>
    %c0_58 = arith.constant 0 : index
    %c0_59 = arith.constant 0 : index
    %143 = vector.load %arg17[%c0_58, %c0_59] : memref<256x128xbf16, #tpu.memory_space<vmem>>, vector<256x128xbf16>
    %cst_60 = arith.constant dense<0.000000e+00> : vector<16x128xf32>
    %144 = tpu.matmul %142, %143, %cst_60 {dimension_numbers = #tpu.dot_dimension_numbers<[1], [0], [0], [1], [0, 0, 1, 1], [], []>} : vector<16x256xbf16>, vector<256x128xbf16>, vector<16x128xf32> -> vector<16x128xf32>
    %c0_61 = arith.constant 0 : index
    %c0_62 = arith.constant 0 : index
    %145 = vector.load %arg18[%c0_61, %c0_62] : memref<1x128xf32, #tpu.memory_space<vmem>>, vector<1x128xf32>
    %146 = vector.broadcast %145 : vector<1x128xf32> to vector<16x128xf32>
    %147 = arith.addf %144, %146 : vector<16x128xf32>
    %148 = arith.addf %133, %147 : vector<16x128xf32>
    %149 = vector.extract_strided_slice %4 {offsets = [2, 0], sizes = [1, 128], strides = [1, 1]} : vector<3x128xf32> to vector<1x128xf32>
    %150 = vector.extract_strided_slice %5 {offsets = [2, 0], sizes = [1, 128], strides = [1, 1]} : vector<3x128xf32> to vector<1x128xf32>
    %cst_63 = arith.constant dense<0.000000e+00> : vector<16xf32>
    %151 = vector.multi_reduction <add>, %148, %cst_63 [1] : vector<16x128xf32> to vector<16xf32>
    %152 = vector.shape_cast %151 : vector<16xf32> to vector<16x1xf32>
    %cst_64 = arith.constant 1.280000e+02 : f32
    %153 = vector.broadcast %cst_64 : f32 to vector<16x1xf32>
    %154 = arith.divf %152, %153 : vector<16x1xf32>
    %155 = vector.broadcast %154 : vector<16x1xf32> to vector<16x128xf32>
    %156 = arith.subf %148, %155 : vector<16x128xf32>
    %157 = arith.mulf %156, %156 : vector<16x128xf32>
    %cst_65 = arith.constant dense<0.000000e+00> : vector<16xf32>
    %158 = vector.multi_reduction <add>, %157, %cst_65 [1] : vector<16x128xf32> to vector<16xf32>
    %159 = vector.shape_cast %158 : vector<16xf32> to vector<16x1xf32>
    %cst_66 = arith.constant 1.280000e+02 : f32
    %160 = vector.broadcast %cst_66 : f32 to vector<16x1xf32>
    %161 = arith.divf %159, %160 : vector<16x1xf32>
    %162 = vector.broadcast %154 : vector<16x1xf32> to vector<16x128xf32>
    %163 = arith.subf %148, %162 : vector<16x128xf32>
    %cst_67 = arith.constant 9.99999974E-6 : f32
    %164 = vector.broadcast %cst_67 : f32 to vector<16x1xf32>
    %165 = arith.addf %161, %164 : vector<16x1xf32>
    %166 = math.rsqrt %165 : vector<16x1xf32>
    %167 = vector.broadcast %166 : vector<16x1xf32> to vector<16x128xf32>
    %168 = arith.mulf %163, %167 : vector<16x128xf32>
    %169 = vector.broadcast %149 : vector<1x128xf32> to vector<16x128xf32>
    %170 = arith.mulf %168, %169 : vector<16x128xf32>
    %171 = vector.broadcast %150 : vector<1x128xf32> to vector<16x128xf32>
    %172 = arith.addf %170, %171 : vector<16x128xf32>
    %173 = vector.shape_cast %172 : vector<16x128xf32> to vector<1x16x128xf32>
    %c0_68 = arith.constant 0 : index
    %c0_69 = arith.constant 0 : index
    %c0_70 = arith.constant 0 : index
    %174 = vector.load %arg19[%c0_68, %c0_69, %c0_70] : memref<1x16x128xf32, #tpu.memory_space<vmem>>, vector<1x16x128xf32>
    tpu.vector_store %arg19[%c0_68, %c0_69, %c0_70], %173 {strides = array<i32>} : memref<1x16x128xf32, #tpu.memory_space<vmem>>, vector<1x16x128xf32>,
    return
  }
  func.func @transform_0(%arg0: i32) -> (i32, i32, i32) {
    %c0_i32 = arith.constant 0 : i32
    %c0_i32_0 = arith.constant 0 : i32
    %c0_i32_1 = arith.constant 0 : i32
    return %arg0, %c0_i32, %c0_i32_0 : i32, i32, i32
  }
  func.func @transform_1(%arg0: i32) -> (i32, i32, i32) {
    %c0_i32 = arith.constant 0 : i32
    %c0_i32_0 = arith.constant 0 : i32
    %c0_i32_1 = arith.constant 0 : i32
    return %arg0, %c0_i32, %c0_i32_0 : i32, i32, i32
  }
  func.func @transform_2(%arg0: i32) -> (i32, i32) {
    %c0_i32 = arith.constant 0 : i32
    %c0_i32_0 = arith.constant 0 : i32
    %c0_i32_1 = arith.constant 0 : i32
    return %c0_i32, %c0_i32_0 : i32, i32
  }
  func.func @transform_3(%arg0: i32) -> (i32, i32) {
    %c0_i32 = arith.constant 0 : i32
    %c0_i32_0 = arith.constant 0 : i32
    %c0_i32_1 = arith.constant 0 : i32
    return %c0_i32, %c0_i32_0 : i32, i32
  }
  func.func @transform_4(%arg0: i32) -> (i32, i32) {
    %c0_i32 = arith.constant 0 : i32
    %c0_i32_0 = arith.constant 0 : i32
    %c0_i32_1 = arith.constant 0 : i32
    return %c0_i32, %c0_i32_0 : i32, i32
  }
  func.func @transform_5(%arg0: i32) -> (i32, i32) {
    %c0_i32 = arith.constant 0 : i32
    %c0_i32_0 = arith.constant 0 : i32
    %c0_i32_1 = arith.constant 0 : i32
    return %c0_i32, %c0_i32_0 : i32, i32
  }
  func.func @transform_6(%arg0: i32) -> (i32, i32) {
    %c0_i32 = arith.constant 0 : i32
    %c0_i32_0 = arith.constant 0 : i32
    %c0_i32_1 = arith.constant 0 : i32
    return %c0_i32, %c0_i32_0 : i32, i32
  }
  func.func @transform_7(%arg0: i32) -> (i32, i32) {
    %c0_i32 = arith.constant 0 : i32
    %c0_i32_0 = arith.constant 0 : i32
    %c0_i32_1 = arith.constant 0 : i32
    return %c0_i32, %c0_i32_0 : i32, i32
  }
  func.func @transform_8(%arg0: i32) -> (i32, i32) {
    %c0_i32 = arith.constant 0 : i32
    %c0_i32_0 = arith.constant 0 : i32
    %c0_i32_1 = arith.constant 0 : i32
    return %c0_i32, %c0_i32_0 : i32, i32
  }
  func.func @transform_9(%arg0: i32) -> (i32, i32) {
    %c0_i32 = arith.constant 0 : i32
    %c0_i32_0 = arith.constant 0 : i32
    %c0_i32_1 = arith.constant 0 : i32
    return %c0_i32, %c0_i32_0 : i32, i32
  }
  func.func @transform_10(%arg0: i32) -> (i32, i32) {
    %c0_i32 = arith.constant 0 : i32
    %c0_i32_0 = arith.constant 0 : i32
    %c0_i32_1 = arith.constant 0 : i32
    return %c0_i32, %c0_i32_0 : i32, i32
  }
  func.func @transform_11(%arg0: i32) -> (i32, i32) {
    %c0_i32 = arith.constant 0 : i32
    %c0_i32_0 = arith.constant 0 : i32
    %c0_i32_1 = arith.constant 0 : i32
    return %c0_i32, %c0_i32_0 : i32, i32
  }
  func.func @transform_12(%arg0: i32) -> (i32, i32) {
    %c0_i32 = arith.constant 0 : i32
    %c0_i32_0 = arith.constant 0 : i32
    %c0_i32_1 = arith.constant 0 : i32
    return %c0_i32, %c0_i32_0 : i32, i32
  }
  func.func @transform_13(%arg0: i32) -> (i32, i32) {
    %c0_i32 = arith.constant 0 : i32
    %c0_i32_0 = arith.constant 0 : i32
    %c0_i32_1 = arith.constant 0 : i32
    return %c0_i32, %c0_i32_0 : i32, i32
  }
  func.func @transform_14(%arg0: i32) -> (i32, i32) {
    %c0_i32 = arith.constant 0 : i32
    %c0_i32_0 = arith.constant 0 : i32
    %c0_i32_1 = arith.constant 0 : i32
    return %c0_i32, %c0_i32_0 : i32, i32
  }
  func.func @transform_15(%arg0: i32) -> (i32, i32) {
    %c0_i32 = arith.constant 0 : i32
    %c0_i32_0 = arith.constant 0 : i32
    %c0_i32_1 = arith.constant 0 : i32
    return %c0_i32, %c0_i32_0 : i32, i32
  }
  func.func @transform_16(%arg0: i32) -> (i32, i32) {
    %c0_i32 = arith.constant 0 : i32
    %c0_i32_0 = arith.constant 0 : i32
    %c0_i32_1 = arith.constant 0 : i32
    return %c0_i32, %c0_i32_0 : i32, i32
  }
  func.func @transform_17(%arg0: i32) -> (i32, i32) {
    %c0_i32 = arith.constant 0 : i32
    %c0_i32_0 = arith.constant 0 : i32
    %c0_i32_1 = arith.constant 0 : i32
    return %c0_i32, %c0_i32_0 : i32, i32
  }
  func.func @transform_18(%arg0: i32) -> (i32, i32, i32) {
    %c0_i32 = arith.constant 0 : i32
    %c0_i32_0 = arith.constant 0 : i32
    %c0_i32_1 = arith.constant 0 : i32
    return %arg0, %c0_i32, %c0_i32_0 : i32, i32, i32
  }
}

</mosaic_0001>

<bundles_post_ra>
// kernel: tpu_custom_call.1
= control target key start
LH: loop header
LB: loop body
LE: loop exit
PB: predicated region body
PF: predicated region fallthrough
CT: control target
= control target key end

     0   :  { %s4064_s0 = inlined_call_operand.hbm [shape: f32[2,16,128], index: 0, kind: input, shape index: {}]   ;;  %s4065_s1 = inlined_call_operand.hbm [shape: f32[2,24,128], index: 1, kind: input, shape index: {}]   ;;  %s4066_s2 = inlined_call_operand.hbm [shape: bf16[128,384], index: 2, kind: input, shape index: {}]   ;;  %s4067_s3 = inlined_call_operand.hbm [shape: f32[1,384], index: 3, kind: input, shape index: {}]   ;;  %s4068_s4 = inlined_call_operand.hbm [shape: bf16[128,128], index: 4, kind: input, shape index: {}]   ;;  %s4069_s5 = inlined_call_operand.hbm [shape: f32[1,128], index: 5, kind: input, shape index: {}]   ;;  %s4070_s6 = inlined_call_operand.hbm [shape: bf16[128,128], index: 6, kind: input, shape index: {}]   ;;  %s4071_s7 = inlined_call_operand.hbm [shape: f32[1,128], index: 7, kind: input, shape index: {}]   ;;  %s4072_s8 = inlined_call_operand.hbm [shape: bf16[128,256], index: 8, kind: input, shape index: {}]   ;;  %s4073_s9 = inlined_call_operand.hbm [shape: f32[1,256], index: 9, kind: input, shape index: {}]   ;;  %s4074_s10 = inlined_call_operand.hbm [shape: bf16[128,128], index: 10, kind: input, shape index: {}]   ;;  %s4075_s11 = inlined_call_operand.hbm [shape: f32[1,128], index: 11, kind: input, shape index: {}]   ;;  %s4076_s12 = inlined_call_operand.vmem [shape: f32[3,128], index: 12, kind: input, shape index: {}]   ;;  %s4077_s13 = inlined_call_operand.vmem [shape: f32[3,128], index: 13, kind: input, shape index: {}]   ;;  %s4078_s14 = inlined_call_operand.hbm [shape: bf16[128,256], index: 14, kind: input, shape index: {}]   ;;  %s4079_s15 = inlined_call_operand.vmem [shape: f32[1,256], index: 15, kind: input, shape index: {}]   ;;  %s4080_s16 = inlined_call_operand.hbm [shape: bf16[256,128], index: 16, kind: input, shape index: {}]   ;;  %s4081_s17 = inlined_call_operand.vmem [shape: f32[1,128], index: 17, kind: input, shape index: {}]   ;;  %s4082_s18 = inlined_call_operand.hbm [shape: f32[2,16,128], index: 18, kind: output, shape index: {}]  }
   0x1   :  { %4091 = sst [smem:[#allocation37_spill]] %s4064_s0 }
   0x2   :  { %4092 = sst [smem:[#allocation38_spill]] %s4065_s1 }
   0x3   :  { %4093 = sst [smem:[#allocation39_spill]] %s4066_s2 }
   0x4   :  { %4094 = sst [smem:[#allocation40_spill]] %s4067_s3 }
   0x5   :  { %4095 = sst [smem:[#allocation41_spill]] %s4068_s4 }
   0x6   :  { %4096 = sst [smem:[#allocation42_spill]] %s4069_s5 }
   0x7   :  { %4097 = sst [smem:[#allocation43_spill]] %s4070_s6 }
   0x8   :  { %4098 = sst [smem:[#allocation44_spill]] %s4071_s7 }
   0x9   :  { %4099 = sst [smem:[#allocation45_spill]] %s4072_s8 }
   0xa   :  { %4100 = sst [smem:[#allocation46_spill]] %s4073_s9 }
   0xb   :  { %4101 = sst [smem:[#allocation47_spill]] %s4074_s10 }
   0xc   :  { %4102 = sst [smem:[#allocation48_spill]] %s4075_s11 }
   0xd   :  { %4103 = sst [smem:[#allocation49_spill]] %s4076_s12 }
   0xe   :  { %4104 = sst [smem:[#allocation50_spill]] %s4077_s13 }
   0xf   :  { %4105 = sst [smem:[#allocation51_spill]] %s4078_s14 }
  0x10   :  { %4106 = sst [smem:[#allocation52_spill]] %s4079_s15 }
  0x11   :  { %4107 = sst [smem:[#allocation53_spill]] %s4081_s17 }
  0x12   :  { %4108 = sst [smem:[#allocation54_spill]] %s4082_s18 }
  0x13   :  { %23 = vsyncpa [#allocation3], 0 }
  0x14   :  { %25 = vsyncpa [#allocation3 + $0x1], 0 }
  0x15   :  { %26 = vsyncpa [#allocation6], 0 }
  0x16   :  { %28 = vsyncpa [#allocation6 + $0x1], 0 }
  0x17   :  { %29 = vsyncpa [#allocation9], 0 }
  0x18   :  { %30 = vsyncpa [#allocation12], 0 }
  0x19   :  { %31 = vsyncpa [#allocation15], 0 }
  0x1a   :  { %32 = vsyncpa [#allocation18], 0 }
  0x1b   :  { %33 = vsyncpa [#allocation21], 0 }
  0x1c   :  { %34 = vsyncpa [#allocation24], 0 }
  0x1d   :  { %35 = vsyncpa [#allocation4], 0 }
  0x1e   :  { %37 = vsyncpa [#allocation4 + $0x1], 0  ;;  %s3674_s27 = smov 0   ;;  %s3676_s28 = smov 0  }
  0x1f   :  { %s3678_s29 = smov 0   ;;  %s3680_s30 = smov 0  }
  0x20 LB: > { %s4109_s1 = sld [smem:[#allocation39_spill]]  ;;  %s3698_s21 = sadd.s32 4294967295, %s3556_s30   ;;  %s3556_s30 = sphi %s3680_s30, %s4142_s30   ;;  %s3552_s29 = sphi %s3678_s29, %s4141_s29   ;;  %s3548_s28 = sphi %s3676_s28, %s4140_s28   ;;  %s3544_s27 = sphi %s3674_s27, %s4139_s27  }
  0x21   : > { %p2298_p0 = scmp.ge.s32.totalorder %s3556_s30, 1  ;;  %p64_p1 = scmp.eq.s32.totalorder %s3698_s21, 0 }
  0x22   : > { %p462_p2 = scmp.lt.s32.totalorder %s3556_s30, 3  ;;  %s3558_s2 = smov [#allocation7]  }
  0x23   : > { %s475_s23 = sshll.u32 %s3558_s2, 4  ;;  %s4112_s3 = sld [smem:[#allocation40_spill]]  ;;  %s476_s23 = int_to_ptr.vmem [resolvable:$true] %s475_s23 }
  0x24   : > { %p3703_p3 = pnand %p2298_p0, %p462_p2  ;;  %s4114_s5 = sld [smem:[#allocation42_spill]] }
  0x25   : > { %s3559_s18 = smov [#allocation8]   ;;  %s3560_s15 = smov 192  }
  0x26   : > { %s473_s20 = sshll.u32 %s4109_s1, 4  ;;  %p2877_p4 = pneg %p3703_p3  ;;  %s474_s20 = int_to_ptr.hbm [resolvable:$true] %s473_s20 }
  0x27   : > { %s4110_s22 = scalar_select %p3703_p3, 1, 0 }
  0x28   : > { %p3715_p6 = pnand %p2877_p4, %p64_p1  ;;  %s490_s17 = sshll.u32 %s3559_s18, 4  ;;  %s491_s17 = int_to_ptr.vmem [resolvable:$true] %s490_s17 }
  0x29   : > { %4111 = sst [smem:[#allocation36_spill]] %s4110_s22  ;;  %s488_s26 = sshll.u32 %s4112_s3, 4  ;;  %s489_s26 = int_to_ptr.hbm [resolvable:$true] %s488_s26 }
  0x2a   : > { %s514_s2 = sshll.u32 %s4114_s5, 4  ;;  %s3561_s13 = smov 12   ;;  %s515_s2 = int_to_ptr.hbm [resolvable:$true] %s514_s2 }
  0x2b   : > { %2880 = dma.hbm_to_vmem [thread:$0]  (!%p3715_p6), %s474_s20, 3072, %s476_s23, [#allocation6], %s3560_s15, %s3560_s15, %s3561_s13  }
  0x2c   : > { %2883 = dma.hbm_to_vmem [thread:$0]  (!%p3715_p6), %s489_s26, 48, %s491_s17, [#allocation9]  }
  0x2d   : > { %s4115_s7 = sld [smem:[#allocation44_spill]]  ;;  %s3562_s12 = smov [#allocation11]  }
  0x2e   : > { %s516_s22 = sshll.u32 %s3562_s12, 4  ;;  %s3563_s18 = smov [#allocation14]   ;;  %s517_s22 = int_to_ptr.vmem [resolvable:$true] %s516_s22 }
  0x2f   : > { %2889 = dma.hbm_to_vmem [thread:$0]  (!%p3715_p6), %s515_s2, 16, %s517_s22, [#allocation12]  }
  0x30   : > { %s542_s19 = sshll.u32 %s3563_s18, 4  ;;  %s4116_s9 = sld [smem:[#allocation46_spill]]  ;;  %s543_s19 = int_to_ptr.vmem [resolvable:$true] %s542_s19 }
  0x31   : > { %s4117_s11 = sld [smem:[#allocation48_spill]]  ;;  %s3564_s12 = smov [#allocation17]  }
  0x32   : > { %s568_s23 = sshll.u32 %s3564_s12, 4  ;;  %s3565_s22 = smov [#allocation20]   ;;  %s569_s23 = int_to_ptr.vmem [resolvable:$true] %s568_s23 }
  0x33   : > { %s540_s3 = sshll.u32 %s4115_s7, 4  ;;  %s594_s26 = sshll.u32 %s3565_s22, 4  ;;  %s541_s3 = int_to_ptr.hbm [resolvable:$true] %s540_s3  ;;  %s595_s26 = int_to_ptr.vmem [resolvable:$true] %s594_s26 }
  0x34   : > { %2895 = dma.hbm_to_vmem [thread:$0]  (!%p3715_p6), %s541_s3, 16, %s543_s19, [#allocation15]  }
  0x35   : > { %s4118_s4 = sld [smem:[#allocation41_spill]]  ;;  %s3566_s3 = smov [#allocation10]  }
  0x36   : > { %s566_s13 = sshll.u32 %s4116_s9, 4  ;;  %s501_s25 = sshll.u32 %s3566_s3, 4  ;;  %s567_s13 = int_to_ptr.hbm [resolvable:$true] %s566_s13  ;;  %s502_s25 = int_to_ptr.vmem [resolvable:$true] %s501_s25 }
  0x37   : > { %s592_s20 = sshll.u32 %s4117_s11, 4  ;;  %s4119_s6 = sld [smem:[#allocation43_spill]]  ;;  %s593_s20 = int_to_ptr.hbm [resolvable:$true] %s592_s20 }
  0x38   : > { %2901 = dma.hbm_to_vmem [thread:$0]  (!%p3715_p6), %s567_s13, 32, %s569_s23, [#allocation18]  }
  0x39   : > { %2907 = dma.hbm_to_vmem [thread:$0]  (!%p3715_p6), %s593_s20, 16, %s595_s26, [#allocation21]  }
  0x3a   : > { %s3567_s15 = smov 64   ;;  %s3568_s13 = smov 4  }
  0x3b   : > { %s499_s24 = sshll.u32 %s4118_s4, 4  ;;  %s3569_s17 = smov [#allocation13]   ;;  %s500_s24 = int_to_ptr.hbm [resolvable:$true] %s499_s24 }
  0x3c   : > { %2886 = dma.hbm_to_vmem [thread:$0]  (!%p3715_p6), %s500_s24, 1024, %s502_s25, [#allocation9], %s3567_s15, %s3567_s15, %s3568_s13  }
  0x3d   : > { %s525_s1 = sshll.u32 %s4119_s6, 4  ;;  %s527_s12 = sshll.u32 %s3569_s17, 4  ;;  %s526_s1 = int_to_ptr.hbm [resolvable:$true] %s525_s1  ;;  %s528_s12 = int_to_ptr.vmem [resolvable:$true] %s527_s12 }
  0x3e   : > { %s4120_s8 = sld [smem:[#allocation45_spill]]  ;;  %s3570_s26 = smov [#allocation16]  }
  0x3f   : > { %2892 = dma.hbm_to_vmem [thread:$0]  (!%p3715_p6), %s526_s1, 1024, %s528_s12, [#allocation12], %s3567_s15, %s3567_s15, %s3568_s13  }
  0x40   : > { %s553_s5 = sshll.u32 %s3570_s26, 4  ;;  %s4121_s10 = sld [smem:[#allocation47_spill]]  ;;  %s554_s5 = int_to_ptr.vmem [resolvable:$true] %s553_s5 }
  0x41   : > { %s4087_s25 = smov 128   ;;  %s4089_s18 = smov 8  }
  0x42   : > { %s3573_s19 = smov [#allocation19]   ;;  %s4122_s14 = sld [smem:[#allocation51_spill]] }
  0x43   : > { %s579_s1 = sshll.u32 %s3573_s19, 4  ;;  %s626_s26 = sshll.u32 %s4080_s16, 4  ;;  %s580_s1 = int_to_ptr.vmem [resolvable:$true] %s579_s1  ;;  %s627_s26 = int_to_ptr.hbm [resolvable:$true] %s626_s26 }
  0x44   : > { %s551_s22 = sshll.u32 %s4120_s8, 4  ;;  %s3575_s24 = smov [#allocation23]   ;;  %s552_s22 = int_to_ptr.hbm [resolvable:$true] %s551_s22 }
  0x45   : > { %2898 = dma.hbm_to_vmem [thread:$0]  (!%p3715_p6), %s552_s22, 2048, %s554_s5, [#allocation15], %s4087_s25, %s4087_s25, %s4089_s18  }
  0x46   : > { %s577_s3 = sshll.u32 %s4121_s10, 4  ;;  %s3574_s5 = smov [#allocation22]   ;;  %s578_s3 = int_to_ptr.hbm [resolvable:$true] %s577_s3 }
  0x47   : > { %2904 = dma.hbm_to_vmem [thread:$0]  (!%p3715_p6), %s578_s3, 1024, %s580_s1, [#allocation18], %s3567_s15, %s3567_s15, %s3568_s13  }
  0x48   : > { %s609_s23 = sshll.u32 %s4122_s14, 4  ;;  %s611_s2 = sshll.u32 %s3574_s5, 4  ;;  %s610_s23 = int_to_ptr.hbm [resolvable:$true] %s609_s23  ;;  %s612_s2 = int_to_ptr.vmem [resolvable:$true] %s611_s2 }
  0x49   : > { %2910 = dma.hbm_to_vmem [thread:$0]  (!%p3715_p6), %s610_s23, 2048, %s612_s2, [#allocation21], %s4087_s25, %s4087_s25, %s4089_s18  }
  0x4a   : > { %s628_s3 = sshll.u32 %s3575_s24, 4  ;;  %s2297_s19 = sadd.s32 4294967294, %s3556_s30   ;;  %s629_s3 = int_to_ptr.vmem [resolvable:$true] %s628_s3 }
  0x4b   : > { %2913 = dma.hbm_to_vmem [thread:$0]  (!%p3715_p6), %s627_s26, 2048, %s629_s3, [#allocation24], %s3567_s15, %s3567_s15, %s3568_s13  }
  0x4c   : > { %s3793_s1 = sadd.s32 1, %s3556_s30   ;;  %s50_s12 = sadd.s32 1, %s3552_s29 }
  0x4d   : > { %s47_s17 = ssub.s32 %s3556_s30, %s3793_s1  ;;  %p57_p8 = scmp.ne.s32.totalorder %s3552_s29, %s3548_s28 }
  0x4e   : > { %p48_p7 = scmp.eq.s32.totalorder %s47_s17, 0  ;;  %p58_p9 = scmp.eq.s32.totalorder %s3556_s30, 0 }
  0x4f   : > { %p63_p10 = scmp.ne.s32.totalorder %s3548_s28, %s3544_s27  ;;  %p449_p13 = scmp.eq.s32.totalorder %s3698_s21, 1 }
  0x50   : > { %s3804_s23 = scalar_select %p48_p7, %s3552_s29, %s50_s12  }
  0x51   : > { %p3806_p11 = por %p58_p9, %p57_p8  ;;  %p3812_p12 = por %p64_p1, %p63_p10 }
  0x52   : > { %p455_p0 = scmp.eq.s32.totalorder %s2297_s19, 1  ;;  %p2937_p2 = scmp.lt.s32.totalorder %s3556_s30, 2 }
  0x53   : > { %s3819_s13 = sand.u32 1, %s3552_s29   ;;  %p3821_p4 = por %p449_p13, %p57_p8 }
  0x54   : > { %p3825_p6 = por %p455_p0, %p63_p10  ;;  %s2312_s26 = sshll.u32 %s3819_s13, 4 }
  0x55   : > { %s2722_s5 = sshll.u32 %s3556_s30, 4  ;;  %s4127_s3 = sld [smem:[#allocation37_spill]] }
  0x56   : > { %s649_s17 = scalar_lea.vmem [#allocation2], %s2312_s26  ;;  %p3836_p7 = pnand %p2937_p2, %p3806_p11 }
  0x57   : > { %s657_s12 = sshll.u32 %s649_s17, 4  ;;  %s2820_s4 = smul.u32 24, %s3819_s13  ;;  %s658_s12 = int_to_ptr.vmem [resolvable:$true] %s657_s12 }
  0x58   : > { %s667_s6 = sand.u32 1, %s3556_s30   ;;  %s646_s7 = scalar_lea.sflag [#allocation3], %s3819_s13 }
  0x59   : > { %p3402_p9 = pneg %p3836_p7 }
  0x5b   : > { %s654_s19 = scalar_lea.hbm %s4127_s3, %s2722_s5  ;;  %s3405_s5 = scalar_lea.hbm %s4127_s3, 32 }
  0x5c   : > { %s655_s25 = sshll.u32 %s654_s19, 4  ;;  %s656_s25 = int_to_ptr.hbm [resolvable:$true] %s655_s25 }
  0x5d   : > { %s3398_s8 = sshra.s32 %s656_s25, 4  ;;  %s3399_s8 = int_to_ptr.hbm [resolvable:$true] %s3398_s8 }
  0x5e   : > { %s3400_s9 = scalar_lea.hbm %s3399_s8, 16  ;;  %p3406_p11 = scmp.lt.s32.totalorder %s3399_s8, %s4127_s3 }
  0x5f   : > { %p3401_p8 = scmp.ne.s32.totalorder %s3399_s8, %s3400_s9  ;;  %p3407_p0 = scmp.lt.s32.totalorder %s3405_s5, %s3400_s9 }
  0x61   : > { %p3403_p10 = pnand %p3402_p9, %p3401_p8  ;;  %p3408_p2 = por %p3407_p0, %p3406_p11 }
  0x63   : > { %p3404_p13 = pneg %p3403_p10 }
  0x65   : > { %p3409_p5 = pnand %p3408_p2, %p3404_p13 }
  0x67   : > { %3412 = shalt.err (!%p3409_p5)
}
  0x68   : > { %s4129_s13 = smov 8   ;;  %s4130_s19 = smov 128  }
  0x69   : > { %2917 = dma.hbm_to_vmem [thread:$0]  (!%p3836_p7), %s656_s25, 256, %s658_s12, %s646_s7, %s4130_s19, %s4130_s19, %s4129_s13  }
  0x6a   : > { %s2821_s17 = smul.u32 24, %s3556_s30  ;;  %s671_s10 = scalar_lea.vmem [#allocation5], %s2820_s4 }
  0x6b   : > { %s679_s0 = sshll.u32 %s671_s10, 4  ;;  %s4131_s14 = sld [smem:[#allocation38_spill]]  ;;  %s680_s0 = int_to_ptr.vmem [resolvable:$true] %s679_s0 }
  0x6c   : > { %s668_s9 = scalar_lea.sflag [#allocation6], %s667_s6 }
  0x71   : > { %s676_s2 = scalar_lea.hbm %s4131_s14, %s2821_s17  ;;  %s3435_s4 = scalar_lea.hbm %s4131_s14, 48 }
  0x72   : > { %s677_s8 = sshll.u32 %s676_s2, 4  ;;  %s678_s8 = int_to_ptr.hbm [resolvable:$true] %s677_s8 }
  0x73   : > { %s3428_s5 = sshra.s32 %s678_s8, 4  ;;  %s3429_s5 = int_to_ptr.hbm [resolvable:$true] %s3428_s5 }
  0x74   : > { %s3430_s24 = scalar_lea.hbm %s3429_s5, 24  ;;  %p3436_p13 = scmp.lt.s32.totalorder %s3429_s5, %s4131_s14 }
  0x75   : > { %p3431_p5 = scmp.ne.s32.totalorder %s3429_s5, %s3430_s24  ;;  %p3437_p11 = scmp.lt.s32.totalorder %s3435_s4, %s3430_s24 }
  0x77   : > { %p3433_p8 = pnand %p3431_p5, %p3402_p9  ;;  %p3438_p0 = por %p3437_p11, %p3436_p13 }
  0x79   : > { %p3434_p10 = pneg %p3433_p8 }
  0x7b   : > { %p3439_p2 = pnand %p3438_p0, %p3434_p10 }
  0x7d   : > { %3442 = shalt.err (!%p3439_p2)
}
  0x7e   : > { %2920 = dma.hbm_to_vmem [thread:$0]  (!%p3836_p7), %s678_s8, 384, %s680_s0, %s668_s9, %s4130_s19, %s4130_s19, %s4129_s13  }
  0x7f   : > { %691 = sbr.rel (%p3703_p3) target bundleno = 2932 (0xb74), region = 92  ;;  %s3880_s11 = sand.u32 (!%p3703_p3), 1, %s3548_s28  }
  0x80   : > { %s2317_s17 = sshll.u32 (!%p3703_p3), %s3880_s11, 4  ;;  %s694_s26 = scalar_lea.sflag (!%p3703_p3), [#allocation3], %s3880_s11 }
  0x81   : > { %s3886_s2 = scalar_lea.vmem (!%p3703_p3), [#allocation2], %s2317_s17 }
  0x84   : > { %3503 = dma.done.wait (%p3812_p12), %s694_s26, 256  }
  0x85   : > { %3505 = vsyncadd (%p3812_p12), %s694_s26, 4294967040  ;;  %s703_s18 = sand.u32 1, %s3698_s21   ;;  %s2822_s13 = smul.u32 24, %s3880_s11 }
  0x86   : > { %s704_s19 = scalar_lea.sflag [#allocation6], %s703_s18 }
  0x87   : > { %s3894_s0 = scalar_lea.vmem [#allocation5], %s2822_s13 }
  0x88   : > { %3507 = dma.done.wait (%p3812_p12), %s704_s19, 384  }
  0x89   : > { %3509 = vsyncadd (%p3812_p12), %s704_s19, 4294966912 }
  0x8a   : > { %3511 = dma.done.wait (%p64_p1), [#allocation6], 3072  }
  0x8b   : > { %3513 = vsyncadd (%p64_p1), [#allocation6], 4294964224 }
  0x8c   : > { %3515 = dma.done.wait (%p64_p1), [#allocation9], 1072  }
  0x8d   : > { %3517 = vsyncadd (%p64_p1), [#allocation9], 4294966224 }
  0x8e   : > { %3519 = dma.done.wait (%p64_p1), [#allocation12], 1040  }
  0x8f   : > { %3521 = vsyncadd (%p64_p1), [#allocation12], 4294966256 }
  0x90   : > { %3523 = dma.done.wait (%p64_p1), [#allocation15], 2064  }
  0x91   : > { %3525 = vsyncadd (%p64_p1), [#allocation15], 4294965232 }
  0x92   : > { %3527 = dma.done.wait (%p64_p1), [#allocation18], 1056  }
  0x93   : > { %3529 = vsyncadd (%p64_p1), [#allocation18], 4294966240 }
  0x94   : > { %3531 = dma.done.wait (%p64_p1), [#allocation21], 2064  }
  0x95   : > { %3533 = vsyncadd (%p64_p1), [#allocation21], 4294965232 }
  0x96   : > { %3535 = dma.done.wait (%p64_p1), [#allocation24], 2048  }
  0x97   : > { %3537 = vsyncadd (%p64_p1), [#allocation24], 4294965248  ;;  %v2417_v0 = vld [vmem:[#allocation7 + $0xa8] sm:$0xf]  ;;  %v2745_v1 = vld [vmem:[#allocation7 + $0xb0] sm:$0xf0] }
  0x98   : > { %v2744_v2 = vld [vmem:[#allocation7 + $0xac] sm:$0xf]  ;;  %v2418_v3 = vor.u32 %v2745_v1, %v2417_v0  ;;  %v2419_v4 = vld [vmem:[#allocation7 + $0xb4] sm:$0xf0]  ;;  %v2405_v5 = vld [vmem:[#allocation7 + $0x90] sm:$0xf] }
  0x99   : > { %v2742_v6 = vld [vmem:[#allocation7 + $0x98] sm:$0xf0]  ;;  %v2422_v7 = vor.u32 %v2744_v2, %v2419_v4  ;;  %v2741_v8 = vld [vmem:[#allocation7 + $0x94] sm:$0xf]  ;;  %v2407_v9 = vld [vmem:[#allocation7 + $0x9c] sm:$0xf0] }
  0x9a   : > { %1003 = vmatpush.bf16.msra.mxu0 %v2418_v3  ;;  %v2406_v10 = vor.u32 %v2742_v6, %v2405_v5  ;;  %v2410_v11 = vor.u32 %v2741_v8, %v2407_v9  ;;  %v2393_v12 = vld [vmem:[#allocation7 + $0x78] sm:$0xf]  ;;  %v2739_v13 = vld [vmem:[#allocation7 + $0x80] sm:$0xf0]  ;;  %v2738_v14 = vld [vmem:[#allocation7 + $0x7c] sm:$0xf] }
  0x9b   : > { %1017 = vmatpush.bf16.msra.mxu1 %v2422_v7  ;;  %v2395_v15 = vld [vmem:[#allocation7 + $0x84] sm:$0xf0]  ;;  %v2394_v16 = vor.u32 %v2739_v13, %v2393_v12  ;;  %v2381_v18 = vld [vmem:[#allocation7 + $0x60] sm:$0xf]  ;;  %v2736_v19 = vld [vmem:[#allocation7 + $0x68] sm:$0xf0] }
  0x9c   : > { %v2398_v17 = vor.u32 %v2738_v14, %v2395_v15  ;;  %v2735_v20 = vld [vmem:[#allocation7 + $0x64] sm:$0xf]  ;;  %v2383_v21 = vld [vmem:[#allocation7 + $0x6c] sm:$0xf0]  ;;  %v2382_v22 = vor.u32 %v2736_v19, %v2381_v18  ;;  %v2369_v23 = vld [vmem:[#allocation7 + $0x48] sm:$0xf]  ;;  %v1053_v19 = vlaneseq }
  0x9d   : > { %v2386_v24 = vor.u32 %v2735_v20, %v2383_v21  ;;  %v2733_v25 = vld [vmem:[#allocation7 + $0x50] sm:$0xf0]  ;;  %v2732_v26 = vld [vmem:[#allocation7 + $0x4c] sm:$0xf]  ;;  %v2371_v27 = vld [vmem:[#allocation7 + $0x54] sm:$0xf0] }
  0x9e   : > { %1004 = vmatpush.bf16.msra.mxu0 %v2406_v10  ;;  %v2370_v28 = vor.u32 %v2733_v25, %v2369_v23  ;;  %v2374_v29 = vor.u32 %v2732_v26, %v2371_v27  ;;  %v2357_v30 = vld [vmem:[#allocation7 + $0x30] sm:$0xf]  ;;  %v2730_v31 = vld [vmem:[#allocation7 + $0x38] sm:$0xf0]  ;;  %v2729_v32 = vld [vmem:[#allocation7 + $0x34] sm:$0xf] }
  0x9f   : > { %1018 = vmatpush.bf16.msra.mxu1 %v2410_v11  ;;  %v2359_v33 = vld [vmem:[#allocation7 + $0x3c] sm:$0xf0]  ;;  %v2358_v34 = vor.u32 %v2730_v31, %v2357_v30  ;;  %v2345_v36 = vld [vmem:[#allocation7 + $0x18] sm:$0xf]  ;;  %v2727_v37 = vld [vmem:[#allocation7 + $0x20] sm:$0xf0] }
  0xa0   : > { %v2362_v35 = vor.u32 %v2729_v32, %v2359_v33  ;;  %v2726_v38 = vld [vmem:[#allocation7 + $0x1c] sm:$0xf]  ;;  %v2347_v39 = vld [vmem:[#allocation7 + $0x24] sm:$0xf0]  ;;  %v2346_v40 = vor.u32 %v2727_v37, %v2345_v36  ;;  %v2333_v42 = vld [vmem:[#allocation7] sm:$0xf] }
  0xa1   : > { %v2350_v41 = vor.u32 %v2726_v38, %v2347_v39  ;;  %v2724_v43 = vld [vmem:[#allocation7 + $0x8] sm:$0xf0]  ;;  %v2723_v44 = vld [vmem:[#allocation7 + $0x4] sm:$0xf]  ;;  %v2335_v45 = vld [vmem:[#allocation7 + $0xc] sm:$0xf0] }
  0xa2   : > { %1005 = vmatpush.bf16.msra.mxu0 %v2394_v16  ;;  %v2334_v46 = vor.u32 %v2724_v43, %v2333_v42  ;;  %v3929_v47 = vld [vmem:[%s3886_s2] sm:$0xff]  ;;  %v3932_v48 = vld [vmem:[%s3886_s2 + $0x8] sm:$0xff]  ;;  %v2338_v49 = vor.u32 %v2723_v44, %v2335_v45  ;;  %v1054_v23 = vshrl.u32 %v1053_v19, 7  ;;  %vm1084_vm1 = vcmask 130048   ;;  %s4133_s9 = sld [smem:[#allocation49_spill]]  ;;  %s2819_s2 = sshll.u32 %s3698_s21, 4 }
  0xa3   : > { %1019 = vmatpush.bf16.msra.mxu1 %v2398_v17  ;;  %v3936_v50 = vpack.c.bf16 %v3932_v48, %v3929_v47  ;;  %v3940_v51 = vld [vmem:[#allocation8] sm:$0x7]  ;;  %v2425_v8 = vld [vmem:[#allocation7 + $0xb0] sm:$0xf]  ;;  %v2746_v9 = vld [vmem:[#allocation7 + $0xb8] sm:$0xf0] }
  0xa4   : > { %v869_v52 = vperm.slane %v3940_v51, 0  ;;  %v870_v54 = vperm.slane %v3940_v51, 1  ;;  %v2413_v10 = vld [vmem:[#allocation7 + $0x98] sm:$0xf]  ;;  %v2426_v11 = vor.u32 %v2746_v9, %v2425_v8  ;;  %v2743_v12 = vld [vmem:[#allocation7 + $0xa0] sm:$0xf0] }
  0xa5   : > { %v2414_v13 = vor.u32 %v2743_v12, %v2413_v10  ;;  %v2401_v14 = vld [vmem:[#allocation7 + $0x80] sm:$0xf]  ;;  %v2740_v15 = vld [vmem:[#allocation7 + $0x88] sm:$0xf0]  ;;  %v2389_v17 = vld [vmem:[#allocation7 + $0x68] sm:$0xf] }
  0xa6   : > { %1006 = vmatpush.bf16.msra.mxu0 %v2382_v22  ;;  %1031 = vmatpush.bf16.msra.mxu2 %v2426_v11  ;;  %v2402_v16 = vor.u32 %v2740_v15, %v2401_v14  ;;  %v2737_v18 = vld [vmem:[#allocation7 + $0x70] sm:$0xf0]  ;;  %v2377_v21 = vld [vmem:[#allocation7 + $0x50] sm:$0xf]  ;;  %v2734_v22 = vld [vmem:[#allocation7 + $0x58] sm:$0xf0] }
  0xa7   : > { %1020 = vmatpush.bf16.msra.mxu1 %v2386_v24  ;;  %v2390_v20 = vor.u32 %v2737_v18, %v2389_v17  ;;  %v1057_v24 = vand.u32 127, %v1053_v19  ;;  %v2378_v25 = vor.u32 %v2734_v22, %v2377_v21  ;;  %v2365_v26 = vld [vmem:[#allocation7 + $0x38] sm:$0xf]  ;;  %v2731_v27 = vld [vmem:[#allocation7 + $0x40] sm:$0xf0]  ;;  %v2748_v17 = vld [vmem:[#allocation10 + $0x8] sm:$0xff] }
  0xa8   : > { %v2728_v30 = vld [vmem:[#allocation7 + $0x28] sm:$0xf0]  ;;  %v2341_v36 = vld [vmem:[#allocation7 + $0x8] sm:$0xf]  ;;  %v2725_v37 = vld [vmem:[#allocation7 + $0x10] sm:$0xf0] }
  0xa9   : > { %vm1058_vm0 = vcmp.ge.s32.totalorder %v1054_v23, %v1057_v24  ;;  %v2342_v38 = vor.u32 %v2725_v37, %v2341_v36  ;;  %v2747_v18 = vld [vmem:[#allocation10] sm:$0xff]  ;;  %v2544_v36 = vld [vmem:[#allocation16 + $0x68] sm:$0xf0]  ;;  %v2550_v37 = vld [vmem:[#allocation16 + $0x70] sm:$0xf]  ;;  %s4134_s7 = sld [smem:[#allocation50_spill]] }
  0xaa   : > { %1007 = vmatpush.bf16.msra.mxu0 %v2370_v28  ;;  %1032 = vmatpush.bf16.msra.mxu2 %v2414_v13  ;;  %v2366_v28 = vor.u32 %v2731_v27, %v2365_v26  ;;  %v3004_v22 = vld [vmem:[#allocation11] ss:$0 sm:$0xff]  ;;  %vm1575_vm10 = vcmask 1043456   ;;  %vm1536_vm11 = vcmask 195584   ;;  %s4135_s10 = sld [smem:[#allocation52_spill]]  ;;  %s825_s15 = scalar_lea.vmem [#allocation25], %s2317_s17 }
  0xab   : > { %1021 = vmatpush.bf16.msra.mxu1 %v2374_v29  ;;  %v2353_v29 = vld [vmem:[#allocation7 + $0x20] sm:$0xf]  ;;  %s4136_s26 = sld [smem:[#allocation53_spill]]  ;;  %s2084_s8 = sshll.u32 %s825_s15, 4  ;;  %s2085_s8 = int_to_ptr.vmem [resolvable:$true] %s2084_s8 }
  0xac   : > { %s4137_s19 = sld [smem:[#allocation54_spill]]  ;;  %s2072_s21 = scalar_lea.sflag [#allocation4], %s3880_s11 }
  0xae   : > { %1008 = vmatpush.bf16.msra.mxu0 %v2358_v34  ;;  %1033 = vmatpush.bf16.msra.mxu2 %v2402_v16  ;;  %v1055_v34 = vadd.s32 8, %v1054_v23  ;;  %v2749_v16 = vld [vmem:[#allocation10 + $0x10] sm:$0xff] }
  0xaf   : > { %1022 = vmatpush.bf16.msra.mxu1 %v2362_v35  ;;  %v2354_v35 = vor.u32 %v2728_v30, %v2353_v29  ;;  %v3576_v29 = vmov 128.0  }
  0xb0   : > { %vm1059_vm2 = vcmp.ge.s32.totalorder %v1055_v34, %v1057_v24  ;;  %v2775_v34 = vld [vmem:[#allocation16 + $0x64] sm:$0xf] }
  0xb2   : > { %1009 = vmatpush.bf16.msra.mxu0 %v2346_v40  ;;  %1034 = vmatpush.bf16.msra.mxu2 %v2390_v20  ;;  %s3478_s25 = scalar_lea.hbm %s4137_s19, 32 }
  0xb3   : > { %1023 = vmatpush.bf16.msra.mxu1 %v2350_v41 }
  0xb6   : > { %1010 = vmatpush.bf16.msra.mxu0 %v2334_v46  ;;  %1035 = vmatpush.bf16.msra.mxu2 %v2378_v25 }
  0xb7   : > { %1024 = vmatpush.bf16.msra.mxu1 %v2338_v49 }
  0xb9   : > { %1011 = vmatmul.bf16.vlgmr.msra.gmra.mxu0 %v3936_v50 }
  0xba   : > { %1025 = vmatmul.bf16.vlgmr.msra.gmra.mxu1 %v3936_v50  ;;  %1036 = vmatpush.bf16.msra.mxu2 %v2366_v28 }
  0xbe   : > { %1037 = vmatpush.bf16.msra.mxu2 %v2354_v35 }
  0xc2   : > { %1038 = vmatpush.bf16.msra.mxu2 %v2342_v38  ;;  %v2778_v38 = vld [vmem:[#allocation16 + $0x74] sm:$0xf0] }
  0xc5   : > { %1039 = vmatmul.bf16.vlgmr.msra.gmra.mxu2 %v3936_v50 }
 0x136   : > { %v1012_v53 = vpop.f32.mrf.mxu0 }
 0x137   : > { %v1026_v55 = vpop.f32.mrf.mxu1  ;;  %v1013_v56 = vadd.f32 %v1012_v53, %v869_v52 }
 0x138   : > { %v1027_v57 = vadd.f32 %v1026_v55, %v870_v54 }
 0x13a   : > { %v1045_v58 = vpack.c.bf16 %v1027_v57, %v1013_v56  ;;  %v871_v56 = vperm.slane %v3940_v51, 2  ;;  %v2750_v51 = vld [vmem:[#allocation10 + $0x18] sm:$0xff] }
 0x13c   : > { %v1051_v0 = vrot.slane %v1045_v58, 4  ;;  %v1060_v6 = vunpack.c.l.b16 %v1045_v58 }
 0x13e   : > { %v1014_v59 = vpop.f32.mrf.mxu0  ;;  %v1064_v2 = vunpack.c.l.b16 %v1051_v0 }
 0x13f   : > { %v1015_v60 = vadd.f32 %v1014_v59, %v869_v52  ;;  %v1028_v61 = vpop.f32.mrf.mxu1 }
 0x140   : > { %v1029_v62 = vadd.f32 %v1028_v61, %v870_v54 }
 0x142   : > { %v1047_v63 = vpack.c.bf16 %v1029_v62, %v1015_v60 }
 0x144   : > { %v1052_v1 = vrot.slane %v1047_v63, 4  ;;  %v1061_v5 = vunpack.c.l.b16 %v1047_v63 }
 0x146   : > { %v1065_v3 = vunpack.c.l.b16 %v1052_v1  ;;  %v1062_v7 = vpack.c.b16 %v1061_v5, %v1060_v6  ;;  %v2754_v1 = vld [vmem:[#allocation10 + $0x38] sm:$0xff]  ;;  %v2751_v5 = vld [vmem:[#allocation10 + $0x20] sm:$0xff] }
 0x148   : > { %v1066_v4 = vpack.c.b16 %v1065_v3, %v1064_v2  ;;  %v1040_v57 = vpop.f32.mrf.mxu2  ;;  %v2753_v2 = vld [vmem:[#allocation10 + $0x30] sm:$0xff]  ;;  %v2752_v3 = vld [vmem:[#allocation10 + $0x28] sm:$0xff] }
 0x149   : > { %v1041_v50 = vadd.f32 %v1040_v57, %v871_v56  ;;  %v2772_v57 = vld [vmem:[#allocation16 + $0x44] sm:$0xf0] }
 0x14a   : > { %1075 = vmatpush.bf16.xpose.msra.mxu3 %v1066_v4 }
 0x14b   : > { %v1046_v58 = vpack.c.bf16 %v1041_v50, %v1041_v50 }
 0x14d   : > { %v1116_v61 = vunpack.c.l.b16 %v1046_v58 }
 0x150   : > { %v1042_v59 = vpop.f32.mrf.mxu2 }
 0x151   : > { %1076 = vmatmul.bf16.vlgmr.msra.gmra.mxu3 %v1062_v7  ;;  %v1043_v60 = vadd.f32 %v1042_v59, %v871_v56  ;;  %v2526_v56 = vld [vmem:[#allocation16 + $0x40] sm:$0xf]  ;;  %v2769_v59 = vld [vmem:[#allocation16 + $0x34] sm:$0xf] }
 0x153   : > { %v1048_v62 = vpack.c.bf16 %v1043_v60, %v1043_v60  ;;  %v2520_v60 = vld [vmem:[#allocation16 + $0x38] sm:$0xf0] }
 0x155   : > { %v1117_v63 = vunpack.c.l.b16 %v1048_v62  ;;  %v2518_v62 = vld [vmem:[#allocation16 + $0x30] sm:$0xf] }
 0x157   : > { %v1118_v0 = vpack.c.b16 %v1117_v63, %v1116_v61  ;;  %v2527_v61 = vor.u32 %v2772_v57, %v2526_v56  ;;  %v2770_v63 = vld [vmem:[#allocation16 + $0x34] sm:$0xf0] }
 0x159   : > { %1130 = vmatpush.bf16.msrb.mxu3 %v1118_v0 }
 0x15d   : > { %1206 = vmatpush.bf16.msra.mxu3 %v2754_v1  ;;  %v2523_v1 = vor.u32 %v2769_v59, %v2520_v60  ;;  %v3977_v59 = vld [vmem:[%s4133_s9] sm:$0x7] }
 0x161   : > { %1207 = vmatpush.bf16.msra.mxu3 %v2753_v2  ;;  %v2767_v2 = vld [vmem:[#allocation16 + $0x24] sm:$0xf] }
 0x165   : > { %1208 = vmatpush.bf16.msra.mxu3 %v2752_v3  ;;  %v2512_v3 = vld [vmem:[#allocation16 + $0x28] sm:$0xf0] }
 0x169   : > { %1209 = vmatpush.bf16.msra.mxu3 %v2751_v5 }
 0x16d   : > { %1210 = vmatpush.bf16.msra.mxu3 %v2750_v51  ;;  %v2510_v51 = vld [vmem:[#allocation16 + $0x20] sm:$0xf] }
 0x171   : > { %1211 = vmatpush.bf16.msra.mxu3 %v2749_v16 }
 0x175   : > { %1212 = vmatpush.bf16.msra.mxu3 %v2748_v17  ;;  %v2763_v17 = vld [vmem:[#allocation16 + $0x4] sm:$0xf] }
 0x179   : > { %1213 = vmatpush.bf16.msra.mxu3 %v2747_v18  ;;  %v2496_v18 = vld [vmem:[#allocation16 + $0x8] sm:$0xf0] }
 0x1d4   : > { %v1077_v31 = vpop.f32.mrf.mxu3 }
 0x1d5   : > { %v1082_v32 = vsel %vm1058_vm0, %v1077_v31, -1e+09 }
 0x1d6   : > { %v1085_v33 = vsel %vm1084_vm1, %v1082_v32, -inf }
 0x1d7   : > { %1086 = vmax.xlane.f32.xlu0 %v1085_v33  ;;  %v2552_v33 = vld [vmem:[#allocation16 + $0x78] sm:$0xf0] }
 0x1dc   : > { %v1079_v39 = vpop.f32.mrf.mxu3 }
 0x1dd   : > { %v1083_v40 = vsel %vm1059_vm2, %v1079_v39, -1e+09  ;;  %v2542_v39 = vld [vmem:[#allocation16 + $0x60] sm:$0xf] }
 0x1de   : > { %v1088_v41 = vsel %vm1084_vm1, %v1083_v40, -inf }
 0x1df   : > { %1089 = vmax.xlane.f32.xlu0 %v1088_v41  ;;  %v2547_v41 = vor.u32 %v2775_v34, %v2544_v36  ;;  %v2762_v34 = vld [vmem:[#allocation13 + $0x38] sm:$0xff]  ;;  %v2759_v36 = vld [vmem:[#allocation13 + $0x20] sm:$0xff] }
 0x1e0   : > { %1344 = vmatpush.bf16.msrb.mxu0 %v2762_v34 }
 0x24a   : > { %v1087_v42 = vpop.xlane.xlu0 %1086 }
 0x24b   : > { %v1091_v43 = vsub.f32 %v1082_v32, %v1087_v42  ;;  %v2777_v32 = vld [vmem:[#allocation16 + $0x74] sm:$0xf] }
 0x24c   : > { %v2555_v35 = vor.u32 %v2777_v32, %v2552_v33  ;;  %v2773_v42 = vld [vmem:[#allocation16 + $0x54] sm:$0xf] }
 0x24d   : > { %v1093_v44 = vmul.f32 1.442695, %v1091_v43  ;;  %v2536_v43 = vld [vmem:[#allocation16 + $0x58] sm:$0xf0] }
 0x24e   : > { %1482 = vmatpush.bf16.msrb.mxu2 %v2555_v35  ;;  %v831_v32 = vld [vmem:[%s3894_s0 + $0x10] sm:$0xff] }
 0x24f   : > { %3008 = vpow2.f32 %v1093_v44  ;;  %v1361_v33 = vpack.c.bf16 %v831_v32, %v831_v32  ;;  %v2761_v35 = vld [vmem:[#allocation13 + $0x30] sm:$0xff] }
 0x250   : > { %1345 = vmatpush.bf16.msrb.mxu0 %v2761_v35 }
 0x252   : > { %v1090_v45 = vpop.xlane.xlu0 %1089  ;;  %1483 = vmatpush.bf16.msrb.mxu2 %v2547_v41 }
 0x253   : > { %v1092_v46 = vsub.f32 %v1083_v40, %v1090_v45  ;;  %v2534_v45 = vld [vmem:[#allocation16 + $0x50] sm:$0xf] }
 0x255   : > { %v3009_v49 = vpop.eup %3008  ;;  %v1095_v52 = vmul.f32 1.442695, %v1092_v46  ;;  %v2774_v46 = vld [vmem:[#allocation16 + $0x54] sm:$0xf0] }
 0x256   : > { %v1097_v53 = vsel %vm1084_vm1, %v3009_v49, 0.0 }
 0x257   : > { %3010 = vpow2.f32 %v1095_v52  ;;  %1098 = vadd.xlane.f32.xlu1 %v1097_v53  ;;  %v2539_v52 = vor.u32 %v2773_v42, %v2536_v43  ;;  %v2771_v53 = vld [vmem:[#allocation16 + $0x44] sm:$0xf] }
 0x259   : > { %1484 = vmatpush.bf16.msrb.mxu2 %v2539_v52 }
 0x25d   : > { %v3011_v54 = vpop.eup %3010 }
 0x25e   : > { %v1100_v55 = vsel %vm1084_vm1, %v3011_v54, 0.0 }
 0x25f   : > { %1101 = vadd.xlane.f32.xlu1 %v1100_v55  ;;  %v2535_v55 = vor.u32 %v2774_v46, %v2534_v45 }
 0x2ca   : > { %v1099_v4 = vpop.xlane.xlu1 %1098 }
 0x2cb   : > { %3012 = vrcp.f32 %v1099_v4  ;;  %v2519_v4 = vor.u32 %v2770_v63, %v2518_v62  ;;  %v1269_v62 = vperm.slane %v3977_v59, 0 }
 0x2d1   : > { %v3013_v7 = vpop.eup %3012 }
 0x2d2   : > { %v1102_v6 = vpop.xlane.xlu1 %1101  ;;  %v1105_v8 = vmul.f32 %v3013_v7, %v3009_v49 }
 0x2d3   : > { %3014 = vrcp.f32 %v1102_v6  ;;  %v2768_v6 = vld [vmem:[#allocation16 + $0x24] sm:$0xf0] }
 0x2d4   : > { %v1107_v10 = vpack.c.bf16 %v1105_v8, %v1105_v8  ;;  %3016 = vrcp.f32 %v3576_v29  ;;  %v2515_v8 = vor.u32 %v2767_v2, %v2512_v3 }
 0x2d6   : > { %v1111_v13 = vunpack.c.l.b16 %v1107_v10  ;;  %v2765_v10 = vld [vmem:[#allocation16 + $0x14] sm:$0xf] }
 0x2d9   : > { %v3015_v9 = vpop.eup %3014 }
 0x2da   : > { %v1106_v11 = vmul.f32 %v3015_v9, %v3011_v54  ;;  %v3017_v30 = vpop.eup %3016  ;;  %v2528_v54 = vld [vmem:[#allocation16 + $0x48] sm:$0xf0] }
 0x2db   : > { %v1227_v31 = vmul.f32 128.0, %v3017_v30  ;;  %v2531_v58 = vor.u32 %v2771_v53, %v2528_v54  ;;  %vm1231_vm3 = vweird.f32 %v3017_v30 }
 0x2dc   : > { %v1108_v12 = vpack.c.bf16 %v1106_v11, %v1106_v11  ;;  %v2504_v11 = vld [vmem:[#allocation16 + $0x18] sm:$0xf0] }
 0x2dd   : > { %v1228_v40 = vsub.f32 1.0, %v1227_v31  ;;  %1485 = vmatpush.bf16.msrb.mxu2 %v2531_v58  ;;  %v2507_v16 = vor.u32 %v2765_v10, %v2504_v11 }
 0x2de   : > { %v1112_v14 = vunpack.c.l.b16 %v1108_v12  ;;  %v2511_v12 = vor.u32 %v2768_v6, %v2510_v51 }
 0x2df   : > { %v1229_v49 = vmul.f32 %v3017_v30, %v1228_v40  ;;  %v2755_v40 = vld [vmem:[#allocation13] sm:$0xff] }
 0x2e0   : > { %v1113_v15 = vpack.c.b16 %v1112_v14, %v1111_v13  ;;  %v2502_v13 = vld [vmem:[#allocation16 + $0x10] sm:$0xf]  ;;  %v2766_v14 = vld [vmem:[#allocation16 + $0x14] sm:$0xf0] }
 0x2e1   : > { %v1230_v50 = vadd.f32 %v3017_v30, %v1229_v49  ;;  %1486 = vmatpush.bf16.msrb.mxu2 %v2523_v1  ;;  %v3984_v1 = vld [vmem:[%s4134_s7] sm:$0x7] }
 0x2e2   : > { %2427 = vmatmul.msk.bf16.vlgmr.msrb.gmra.mxu3 %vm1084_vm1, %v1113_v15 }
 0x2e3   : > { %v3956_v0 = vsel %vm1231_vm3, %v3017_v30, %v1230_v50 }
 0x2e5   : > { %1487 = vmatpush.bf16.msrb.mxu2 %v2515_v8 }
 0x2e9   : > { %1488 = vmatpush.bf16.msrb.mxu2 %v2507_v16 }
 0x365   : > { %v1132_v19 = vpop.f32.mrf.mxu3 }
 0x36d   : > { %v1134_v20 = vpop.f32.mrf.mxu3 }
 0x36e   : > { %v1137_v21 = vpack.c.bf16 %v1134_v20, %v1132_v19  ;;  %v2503_v19 = vor.u32 %v2766_v14, %v2502_v13  ;;  %v1378_v13 = vld [vmem:[#allocation17] sm:$0x3] }
 0x36f   : > { %v1380_v14 = vperm.slane %v1378_v13, 0 }
 0x370   : > { %1214 = vmatmul.bf16.vlgmr.msra.gmra.mxu3 %v1137_v21  ;;  %v2494_v21 = vld [vmem:[#allocation16] sm:$0xf] }
 0x3f3   : > { %v1215_v23 = vpop.f32.mrf.mxu3 }
 0x3f4   : > { %v1216_v24 = vadd.f32 %v3004_v22, %v1215_v23 }
 0x3f6   : > { %v1220_v25 = vadd.f32 %v1216_v24, %v3929_v47  ;;  %v2551_v47 = vor.u32 %v2778_v38, %v2550_v37  ;;  %v2499_v24 = vor.u32 %v2763_v17, %v2496_v18  ;;  %v2758_v37 = vld [vmem:[#allocation13 + $0x18] sm:$0xff]  ;;  %v2757_v38 = vld [vmem:[#allocation13 + $0x10] sm:$0xff] }
 0x3f8   : > { %1222 = vadd.xlane.f32.xlu2 %v1220_v25  ;;  %1464 = vmatpush.bf16.msrb.mxu1 %v2551_v47  ;;  %v2756_v47 = vld [vmem:[#allocation13 + $0x8] sm:$0xff] }
 0x3f9   : > { %1489 = vmatpush.bf16.msrb.mxu2 %v2499_v24 }
 0x3fb   : > { %v1217_v26 = vpop.f32.mrf.mxu3 }
 0x3fc   : > { %v1218_v27 = vadd.f32 %v3004_v22, %v1217_v26  ;;  %v2764_v22 = vld [vmem:[#allocation16 + $0x4] sm:$0xf0] }
 0x3fd   : > { %v830_v26 = vld [vmem:[%s3894_s0 + $0x8] sm:$0xff]  ;;  %v2495_v29 = vor.u32 %v2764_v22, %v2494_v21 }
 0x3fe   : > { %v3953_v28 = vadd.f32 %v1218_v27, %v3932_v48  ;;  %v2776_v48 = vld [vmem:[#allocation16 + $0x64] sm:$0xf0] }
 0x3ff   : > { %v2543_v44 = vor.u32 %v2776_v48, %v2542_v39 }
 0x400   : > { %1224 = vadd.xlane.f32.xlu2 %v3953_v28 }
 0x401   : > { %1465 = vmatpush.bf16.msrb.mxu1 %v2543_v44 }
 0x405   : > { %1466 = vmatpush.bf16.msrb.mxu1 %v2535_v55 }
 0x409   : > { %1467 = vmatpush.bf16.msrb.mxu1 %v2527_v61 }
 0x40d   : > { %1468 = vmatpush.bf16.msrb.mxu1 %v2519_v4 }
 0x411   : > { %1469 = vmatpush.bf16.msrb.mxu1 %v2511_v12 }
 0x415   : > { %1470 = vmatpush.bf16.msrb.mxu1 %v2503_v19 }
 0x419   : > { %1471 = vmatpush.bf16.msrb.mxu1 %v2495_v29 }
 0x46b   : > { %v1223_v5 = vpop.xlane.xlu2 %1222 }
 0x46c   : > { %v1233_v7 = vmul.f32 %v3956_v0, %v1223_v5  ;;  %v1272_v5 = vperm.slane %v3984_v1, 0 }
 0x46e   : > { %v3959_v9 = vsub.f32 %v1220_v25, %v1233_v7  ;;  %v829_v25 = vld [vmem:[%s3894_s0] sm:$0xff]  ;;  %s2083_s0 = scalar_lea.hbm %s4137_s19, %s2819_s2 }
 0x46f   : > { %v1360_v31 = vpack.c.bf16 %v830_v26, %v829_v25  ;;  %s2086_s9 = sshll.u32 %s2083_s0, 4  ;;  %s2087_s9 = int_to_ptr.hbm [resolvable:$true] %s2086_s9 }
 0x470   : > { %v1237_v15 = vmul.f32 %v3959_v9, %v3959_v9  ;;  %s3472_s5 = sshra.s32 %s2087_s9, 4  ;;  %s3473_s5 = int_to_ptr.hbm [resolvable:$true] %s3472_s5 }
 0x471   : > { %1490 = vmatmul.bf16.vlgmr.msrb.gmra.mxu2 %v1360_v31  ;;  %1472 = vmatmul.bf16.vlgmr.msrb.gmra.mxu1 %v1360_v31  ;;  %s3474_s24 = scalar_lea.hbm %s3473_s5, 16  ;;  %p3479_p7 = scmp.lt.s32.totalorder %s3473_s5, %s4137_s19 }
 0x472   : > { %1239 = vadd.xlane.f32.xlu0 %v1237_v15  ;;  %v1381_v15 = vperm.slane %v1378_v13, 1  ;;  %v2782_v13 = vld [vmem:[#allocation19 + $0x18] sm:$0xff]  ;;  %p3475_p1 = scmp.ne.s32.totalorder %s3473_s5, %s3474_s24  ;;  %p3480_p9 = scmp.lt.s32.totalorder %s3478_s25, %s3474_s24 }
 0x473   : > { %v1225_v20 = vpop.xlane.xlu2 %1224 }
 0x474   : > { %v1234_v23 = vmul.f32 %v3956_v0, %v1225_v20  ;;  %p3476_p3 = pnand %p3475_p1, %p3821_p4  ;;  %p3481_p5 = por %p3480_p9, %p3479_p7 }
 0x476   : > { %v3967_v27 = vsub.f32 %v3953_v28, %v1234_v23  ;;  %v2760_v28 = vld [vmem:[#allocation13 + $0x28] sm:$0xff]  ;;  %p3477_p12 = pneg %p3476_p3 }
 0x477   : > { %1346 = vmatpush.bf16.msrb.mxu0 %v2760_v28 }
 0x478   : > { %v1238_v30 = vmul.f32 %v3967_v27, %v3967_v27  ;;  %p3482_p8 = pnand %p3481_p5, %p3477_p12 }
 0x47a   : > { %1241 = vadd.xlane.f32.xlu1 %v1238_v30 }
 0x47b   : > { %1347 = vmatpush.bf16.msrb.mxu0 %v2759_v36 }
 0x47f   : > { %1348 = vmatpush.bf16.msrb.mxu0 %v2758_v37 }
 0x481   : > { %1495 = vmatmul.bf16.gmra.mxu2 %v1361_v33  ;;  %1477 = vmatmul.bf16.gmra.mxu1 %v1361_v33 }
 0x483   : > { %1349 = vmatpush.bf16.msrb.mxu0 %v2757_v38 }
 0x487   : > { %1350 = vmatpush.bf16.msrb.mxu0 %v2756_v47 }
 0x48b   : > { %1351 = vmatpush.bf16.msrb.mxu0 %v2755_v40 }
 0x4e5   : > { %v1240_v39 = vpop.xlane.xlu0 %1239 }
 0x4e6   : > { %v1243_v41 = vmul.f32 %v1240_v39, %v3956_v0 }
 0x4e8   : > { %v1245_v48 = vadd.f32 1e-05, %v1243_v41 }
 0x4ea   : > { %3018 = vrsqrt.f32 %v1245_v48  ;;  %vm1253_vm5 = vweird.f32 %v1245_v48 }
 0x4ed   : > { %v1242_v42 = vpop.xlane.xlu1 %1241 }
 0x4ee   : > { %v1244_v43 = vmul.f32 %v1242_v42, %v3956_v0  ;;  %v3005_v42 = vld [vmem:[#allocation14] ss:$0 sm:$0xff] }
 0x4f0   : > { %v3019_v44 = vpop.eup %3018  ;;  %v1246_v45 = vadd.f32 1e-05, %v1244_v43 }
 0x4f1   : > { %v1248_v46 = vmul.f32 %v3019_v44, %v1245_v48  ;;  %vm1254_vm4 = vweird.f32 %v3019_v44 }
 0x4f2   : > { %3020 = vrsqrt.f32 %v1246_v45  ;;  %vm1255_vm6 = vmor %vm1253_vm5, %vm1254_vm4  ;;  %vm1263_vm8 = vweird.f32 %v1246_v45 }
 0x4f3   : > { %v1249_v49 = vmul.f32 %v3019_v44, %v1248_v46 }
 0x4f4   : > { %v1491_v10 = vpop.f32.mrf.mxu2 }
 0x4f5   : > { %v1250_v52 = vmul.f32 0.5, %v1249_v49  ;;  %v1492_v18 = vadd.f32 %v1491_v10, %v1381_v15  ;;  %v2784_v10 = vld [vmem:[#allocation19 + $0x28] sm:$0xff] }
 0x4f7   : > { %v1251_v53 = vsub.f32 1.5, %v1250_v52 }
 0x4f8   : > { %v3021_v54 = vpop.eup %3020 }
 0x4f9   : > { %v1252_v55 = vmul.f32 %v3019_v44, %v1251_v53  ;;  %v1258_v56 = vmul.f32 %v3021_v54, %v1246_v45  ;;  %vm1264_vm7 = vweird.f32 %v3021_v54 }
 0x4fa   : > { %vm1265_vm9 = vmor %vm1263_vm8, %vm1264_vm7 }
 0x4fb   : > { %v1259_v57 = vmul.f32 %v3021_v54, %v1258_v56  ;;  %v1256_v50 = vsel %vm1255_vm6, %v3019_v44, %v1252_v55 }
 0x4fc   : > { %v1267_v61 = vmul.f32 %v1256_v50, %v3959_v9  ;;  %v1473_v9 = vpop.f32.mrf.mxu1  ;;  %v1493_v12 = vpop.f32.mrf.mxu2 }
 0x4fd   : > { %v1260_v58 = vmul.f32 0.5, %v1259_v57  ;;  %v1474_v17 = vadd.f32 %v1473_v9, %v1380_v14  ;;  %v1494_v20 = vadd.f32 %v1493_v12, %v1381_v15  ;;  %v2785_v9 = vld [vmem:[#allocation19 + $0x30] sm:$0xff]  ;;  %v2783_v12 = vld [vmem:[#allocation19 + $0x20] sm:$0xff] }
 0x4fe   : > { %v1270_v4 = vmul.f32 %v1269_v62, %v1267_v61 }
 0x4ff   : > { %v1261_v60 = vsub.f32 1.5, %v1260_v58  ;;  %v1500_v22 = vpack.c.bf16 %v1492_v18, %v1474_v17 }
 0x500   : > { %v3988_v6 = vadd.f32 %v1272_v5, %v1270_v4 }
 0x501   : > { %v1262_v63 = vmul.f32 %v3021_v54, %v1261_v60  ;;  %v1506_v29 = vrot.slane %v1500_v22, 4  ;;  %v1515_v37 = vunpack.c.l.b16 %v1500_v22 }
 0x503   : > { %v1266_v2 = vsel %vm1265_vm9, %v3021_v54, %v1262_v63  ;;  %v1566_v35 = vunpack.c.l.b16 %v1506_v29 }
 0x504   : > { %v1268_v3 = vmul.f32 %v1266_v2, %v3967_v27  ;;  %v1475_v11 = vpop.f32.mrf.mxu1  ;;  %v1496_v24 = vpop.f32.mrf.mxu2 }
 0x505   : > { %v1476_v19 = vadd.f32 %v1475_v11, %v1380_v14  ;;  %v1497_v25 = vadd.f32 %v1496_v24, %v1381_v15 }
 0x506   : > { %v1271_v51 = vmul.f32 %v1269_v62, %v1268_v3 }
 0x507   : > { %v1501_v23 = vpack.c.bf16 %v1494_v20, %v1476_v19 }
 0x508   : > { %v3990_v7 = vadd.f32 %v1272_v5, %v1271_v51 }
 0x509   : > { %v1507_v30 = vrot.slane %v1501_v23, 4  ;;  %v1516_v38 = vunpack.c.l.b16 %v1501_v23 }
 0x50a   : > { %v1275_v8 = vpack.c.bf16 %v3990_v7, %v3988_v6 }
 0x50b   : > { %v1567_v28 = vunpack.c.l.b16 %v1507_v30  ;;  %v1518_v41 = vpack.c.b16 %v1516_v38, %v1515_v37 }
 0x50c   : > { %1352 = vmatmul.bf16.vlgmr.msrb.gmra.mxu0 %v1275_v8  ;;  %v1478_v16 = vpop.f32.mrf.mxu1  ;;  %v1498_v36 = vpop.f32.mrf.mxu2  ;;  %v2786_v8 = vld [vmem:[#allocation19 + $0x38] sm:$0xff] }
 0x50d   : > { %v1479_v21 = vadd.f32 %v1478_v16, %v1380_v14  ;;  %v1569_v40 = vpack.c.b16 %v1567_v28, %v1566_v35  ;;  %1662 = vmatpush.bf16.msra.mxu1 %v2786_v8  ;;  %v2781_v16 = vld [vmem:[#allocation19 + $0x10] sm:$0xff] }
 0x50e   : > { %v2615_v8 = vld [vmem:[#allocation22 + $0x30] sm:$0xf] }
 0x50f   : > { %v1502_v27 = vpack.c.bf16 %v1497_v25, %v1479_v21  ;;  %v2780_v25 = vld [vmem:[#allocation19 + $0x8] sm:$0xff] }
 0x511   : > { %v1508_v31 = vrot.slane %v1502_v27, 4  ;;  %v1517_v32 = vunpack.c.l.b16 %v1502_v27  ;;  %1663 = vmatpush.bf16.msra.mxu1 %v2785_v9  ;;  %v2794_v9 = vld [vmem:[#allocation22 + $0x34] sm:$0xf0] }
 0x513   : > { %v1519_v33 = vpack.c.b16 %v1517_v32, %v1517_v32  ;;  %v1568_v34 = vunpack.c.l.b16 %v1508_v31  ;;  %v3006_v31 = vld [vmem:[#allocation20] ss:$0 sm:$0xff] }
 0x514   : > { %v1480_v26 = vpop.f32.mrf.mxu1 }
 0x515   : > { %1528 = vmatpush.bf16.xpose.msrb.mxu3 %v1519_v33  ;;  %v1570_v47 = vpack.c.b16 %v1568_v34, %v1568_v34  ;;  %1664 = vmatpush.bf16.msra.mxu1 %v2784_v10  ;;  %v2779_v26 = vld [vmem:[#allocation19] sm:$0xff]  ;;  %v2793_v10 = vld [vmem:[#allocation22 + $0x34] sm:$0xf] }
 0x517   : > { %v1577_v39 = vsel %vm1575_vm10, %v1570_v47, 0 }
 0x518   : > { %1585 = vmatpush.bf16.msra.mxu0 %v1577_v39 }
 0x519   : > { %1665 = vmatpush.bf16.msra.mxu1 %v2783_v12  ;;  %v2617_v12 = vld [vmem:[#allocation22 + $0x38] sm:$0xf0] }
 0x51c   : > { %1586 = vmatpush.bf16.msra.mxu0 %v1569_v40 }
 0x51d   : > { %1529 = vmatpush.bf16.xpose.msrb.mxu3 %v1518_v41  ;;  %1666 = vmatpush.bf16.msra.mxu1 %v2782_v13  ;;  %v2620_v13 = vor.u32 %v2793_v10, %v2617_v12  ;;  %v2806_v10 = vld [vmem:[#allocation23 + $0x18] sm:$0xff]  ;;  %v2813_v12 = vld [vmem:[#allocation23 + $0x50] sm:$0xff] }
 0x521   : > { %1667 = vmatpush.bf16.msra.mxu1 %v2781_v16  ;;  %v2791_v16 = vld [vmem:[#allocation22 + $0x24] sm:$0xf] }
 0x525   : > { %1668 = vmatpush.bf16.msra.mxu1 %v2780_v25 }
 0x529   : > { %1669 = vmatpush.bf16.msra.mxu1 %v2779_v26  ;;  %v2591_v26 = vld [vmem:[#allocation22] sm:$0xf] }
 0x589   : > { %v1353_v48 = vpop.f32.mrf.mxu0 }
 0x58a   : > { %v1354_v43 = vadd.f32 %v3005_v42, %v1353_v48 }
 0x58c   : > { %v1358_v45 = vpack.c.bf16 %v1354_v43, %v1354_v43  ;;  %v2801_v43 = vld [vmem:[#allocation22 + $0x74] sm:$0xf] }
 0x58e   : > { %v1511_v52 = vunpack.c.l.b16 %v1358_v45  ;;  %v2649_v45 = vld [vmem:[#allocation22 + $0x78] sm:$0xf0] }
 0x591   : > { %v1355_v44 = vpop.f32.mrf.mxu0 }
 0x592   : > { %v1356_v46 = vadd.f32 %v3005_v42, %v1355_v44  ;;  %v2802_v42 = vld [vmem:[#allocation22 + $0x74] sm:$0xf0] }
 0x594   : > { %v1359_v49 = vpack.c.bf16 %v1356_v46, %v1356_v46  ;;  %v2652_v46 = vor.u32 %v2801_v43, %v2649_v45  ;;  %v2816_v43 = vld [vmem:[#allocation23 + $0x68] sm:$0xff] }
 0x596   : > { %v1512_v53 = vunpack.c.l.b16 %v1359_v49  ;;  %1841 = vmatpush.bf16.msra.mxu3 %v2652_v46  ;;  %v2639_v49 = vld [vmem:[#allocation22 + $0x60] sm:$0xf] }
 0x597   : > { %v2807_v46 = vld [vmem:[#allocation23 + $0x20] sm:$0xff] }
 0x598   : > { %v1513_v54 = vpack.c.b16 %v1512_v53, %v1511_v52  ;;  %v2800_v52 = vld [vmem:[#allocation22 + $0x64] sm:$0xf0]  ;;  %v2799_v53 = vld [vmem:[#allocation22 + $0x64] sm:$0xf] }
 0x59a   : > { %1530 = vmatmul.bf16.vlgmr.msrb.gmra.mxu3 %v1513_v54  ;;  %v2640_v54 = vor.u32 %v2800_v52, %v2639_v49  ;;  %v2815_v49 = vld [vmem:[#allocation23 + $0x60] sm:$0xff] }
 0x61d   : > { %v1531_v55 = vpop.f32.mrf.mxu3 }
 0x61e   : > { %v1537_v56 = vsel %vm1536_vm11, %v1531_v55, -inf }
 0x61f   : > { %1538 = vmax.xlane.f32.xlu2 %v1537_v56 }
 0x625   : > { %v1533_v57 = vpop.f32.mrf.mxu3 }
 0x626   : > { %v1540_v50 = vsel %vm1536_vm11, %v1533_v57, -inf }
 0x627   : > { %1541 = vmax.xlane.f32.xlu0 %v1540_v50  ;;  %v2798_v50 = vld [vmem:[#allocation22 + $0x54] sm:$0xf0] }
 0x692   : > { %v1539_v58 = vpop.xlane.xlu2 %1538 }
 0x693   : > { %v1543_v60 = vsub.f32 %v1531_v55, %v1539_v58  ;;  %v2641_v55 = vld [vmem:[#allocation22 + $0x68] sm:$0xf0]  ;;  %v2797_v58 = vld [vmem:[#allocation22 + $0x54] sm:$0xf] }
 0x694   : > { %v2644_v56 = vor.u32 %v2799_v53, %v2641_v55 }
 0x695   : > { %v1545_v61 = vmul.f32 1.442695, %v1543_v60 }
 0x696   : > { %1842 = vmatpush.bf16.msra.mxu3 %v2644_v56 }
 0x697   : > { %3022 = vpow2.f32 %v1545_v61  ;;  %v2633_v61 = vld [vmem:[#allocation22 + $0x58] sm:$0xf0] }
 0x69a   : > { %v1542_v62 = vpop.xlane.xlu0 %1541 }
 0x69b   : > { %v1544_v63 = vsub.f32 %v1533_v57, %v1542_v62  ;;  %v2631_v57 = vld [vmem:[#allocation22 + $0x50] sm:$0xf]  ;;  %v2636_v62 = vor.u32 %v2797_v58, %v2633_v61  ;;  %v1718_v61 = vperm.slane %v3977_v59, 1 }
 0x69c   : > { %v2632_v60 = vor.u32 %v2798_v50, %v2631_v57 }
 0x69d   : > { %v3023_v2 = vpop.eup %3022  ;;  %v1547_v3 = vmul.f32 1.442695, %v1544_v63  ;;  %1843 = vmatpush.bf16.msra.mxu3 %v2636_v62  ;;  %v2623_v63 = vld [vmem:[#allocation22 + $0x40] sm:$0xf] }
 0x69e   : > { %v1549_v4 = vsel %vm1536_vm11, %v3023_v2, 0.0 }
 0x69f   : > { %3024 = vpow2.f32 %v1547_v3  ;;  %1550 = vadd.xlane.f32.xlu1 %v1549_v4  ;;  %v2795_v3 = vld [vmem:[#allocation22 + $0x44] sm:$0xf] }
 0x6a5   : > { %v3025_v5 = vpop.eup %3024 }
 0x6a6   : > { %v1552_v51 = vsel %vm1536_vm11, %v3025_v5, 0.0 }
 0x6a7   : > { %1553 = vadd.xlane.f32.xlu2 %v1552_v51 }
 0x712   : > { %v1551_v11 = vpop.xlane.xlu1 %1550 }
 0x713   : > { %3026 = vrcp.f32 %v1551_v11  ;;  %v2616_v11 = vor.u32 %v2794_v9, %v2615_v8 }
 0x719   : > { %v3027_v15 = vpop.eup %3026 }
 0x71a   : > { %v1554_v14 = vpop.xlane.xlu2 %1553  ;;  %v1557_v17 = vmul.f32 %v3027_v15, %v3023_v2  ;;  %v2796_v2 = vld [vmem:[#allocation22 + $0x44] sm:$0xf0] }
 0x71b   : > { %3028 = vrcp.f32 %v1554_v14  ;;  %v2624_v4 = vor.u32 %v2796_v2, %v2623_v63  ;;  %v2607_v14 = vld [vmem:[#allocation22 + $0x20] sm:$0xf]  ;;  %v2792_v15 = vld [vmem:[#allocation22 + $0x24] sm:$0xf0] }
 0x71c   : > { %v1559_v19 = vpack.c.bf16 %v1557_v17, %v1557_v17  ;;  %v2608_v17 = vor.u32 %v2792_v15, %v2607_v14  ;;  %v2812_v14 = vld [vmem:[#allocation23 + $0x48] sm:$0xff]  ;;  %v2811_v15 = vld [vmem:[#allocation23 + $0x40] sm:$0xff] }
 0x71e   : > { %v1563_v22 = vunpack.c.l.b16 %v1559_v19 }
 0x721   : > { %v3029_v18 = vpop.eup %3028 }
 0x722   : > { %v1558_v20 = vmul.f32 %v3029_v18, %v3025_v5  ;;  %v2625_v5 = vld [vmem:[#allocation22 + $0x48] sm:$0xf0] }
 0x723   : > { %v2628_v51 = vor.u32 %v2795_v3, %v2625_v5  ;;  %v2609_v18 = vld [vmem:[#allocation22 + $0x28] sm:$0xf0] }
 0x724   : > { %v1560_v21 = vpack.c.bf16 %v1558_v20, %v1558_v20  ;;  %v2612_v19 = vor.u32 %v2791_v16, %v2609_v18  ;;  %v2599_v20 = vld [vmem:[#allocation22 + $0x10] sm:$0xf]  ;;  %v1741_v16 = vld [vmem:[%s4135_s10] sm:$0x3] }
 0x725   : > { %1844 = vmatpush.bf16.msra.mxu3 %v2628_v51 }
 0x726   : > { %v1564_v23 = vunpack.c.l.b16 %v1560_v21  ;;  %v2790_v21 = vld [vmem:[#allocation22 + $0x14] sm:$0xf0] }
 0x728   : > { %v1565_v24 = vpack.c.b16 %v1564_v23, %v1563_v22  ;;  %v2789_v22 = vld [vmem:[#allocation22 + $0x14] sm:$0xf]  ;;  %v2600_v23 = vor.u32 %v2790_v21, %v2599_v20  ;;  %v1744_v20 = vperm.slane %v1741_v16, 1 }
 0x729   : > { %1845 = vmatpush.bf16.msra.mxu3 %v2620_v13  ;;  %v2804_v13 = vld [vmem:[#allocation23 + $0x8] sm:$0xff] }
 0x72a   : > { %2556 = vmatmul.msk.bf16.vlgmr.msra.gmra.mxu0 %vm1536_vm11, %v1565_v24  ;;  %v2601_v24 = vld [vmem:[#allocation22 + $0x18] sm:$0xf0] }
 0x72b   : > { %v2604_v25 = vor.u32 %v2789_v22, %v2601_v24 }
 0x72d   : > { %1846 = vmatpush.bf16.msra.mxu3 %v2612_v19  ;;  %v1743_v19 = vperm.slane %v1741_v16, 0 }
 0x731   : > { %1847 = vmatpush.bf16.msra.mxu3 %v2604_v25 }
 0x7a7   : > { %v1588_v27 = vpop.f32.mrf.mxu0 }
 0x7af   : > { %v1590_v29 = vpop.f32.mrf.mxu0 }
 0x7b0   : > { %v1593_v30 = vpack.c.bf16 %v1590_v29, %v1588_v27  ;;  %v2788_v27 = vld [vmem:[#allocation22 + $0x4] sm:$0xf0]  ;;  %v2787_v29 = vld [vmem:[#allocation22 + $0x4] sm:$0xf] }
 0x7b2   : > { %1670 = vmatmul.bf16.vlgmr.msra.gmra.mxu1 %v1593_v30 }
 0x82f   : > { %v1671_v32 = vpop.f32.mrf.mxu1 }
 0x830   : > { %v1672_v33 = vadd.f32 %v3006_v31, %v1671_v32  ;;  %v2593_v32 = vld [vmem:[#allocation22 + $0x8] sm:$0xf0] }
 0x832   : > { %v1676_v34 = vadd.f32 %v1672_v33, %v3988_v6 }
 0x834   : > { %1678 = vadd.xlane.f32.xlu0 %v1676_v34 }
 0x837   : > { %v1673_v35 = vpop.f32.mrf.mxu1 }
 0x838   : > { %v1674_v28 = vadd.f32 %v3006_v31, %v1673_v35  ;;  %v2592_v31 = vor.u32 %v2788_v27, %v2591_v26 }
 0x83a   : > { %v1677_v36 = vadd.f32 %v1674_v28, %v3990_v7  ;;  %v2647_v7 = vld [vmem:[#allocation22 + $0x70] sm:$0xf]  ;;  %v2810_v28 = vld [vmem:[#allocation23 + $0x38] sm:$0xff] }
 0x83b   : > { %v2648_v44 = vor.u32 %v2802_v42, %v2647_v7  ;;  %1993 = vmatpush.bf16.msrb.mxu0 %v2810_v28  ;;  %v2808_v42 = vld [vmem:[#allocation23 + $0x28] sm:$0xff] }
 0x83c   : > { %1680 = vadd.xlane.f32.xlu1 %v1677_v36 }
 0x83d   : > { %1827 = vmatpush.bf16.msra.mxu2 %v2648_v44 }
 0x841   : > { %1828 = vmatpush.bf16.msra.mxu2 %v2640_v54 }
 0x845   : > { %1829 = vmatpush.bf16.msra.mxu2 %v2632_v60 }
 0x849   : > { %1830 = vmatpush.bf16.msra.mxu2 %v2624_v4  ;;  %v1721_v4 = vperm.slane %v3984_v1, 1 }
 0x84d   : > { %1831 = vmatpush.bf16.msra.mxu2 %v2616_v11  ;;  %v2814_v11 = vld [vmem:[#allocation23 + $0x58] sm:$0xff] }
 0x851   : > { %1832 = vmatpush.bf16.msra.mxu2 %v2608_v17 }
 0x855   : > { %1833 = vmatpush.bf16.msra.mxu2 %v2600_v23 }
 0x859   : > { %1834 = vmatpush.bf16.msra.mxu2 %v2592_v31 }
 0x8a7   : > { %v1679_v37 = vpop.xlane.xlu0 %1678 }
 0x8a8   : > { %v1682_v38 = vmul.f32 %v1679_v37, %v3956_v0 }
 0x8aa   : > { %v4002_v47 = vsub.f32 %v1676_v34, %v1682_v38  ;;  %v2596_v34 = vor.u32 %v2787_v29, %v2593_v32 }
 0x8ac   : > { %v1686_v39 = vmul.f32 %v4002_v47, %v4002_v47  ;;  %1848 = vmatpush.bf16.msra.mxu3 %v2596_v34  ;;  %v3007_v34 = vld [vmem:[%s4136_s26] ss:$0 sm:$0xff] }
 0x8ae   : > { %1688 = vadd.xlane.f32.xlu2 %v1686_v39  ;;  %v2809_v39 = vld [vmem:[#allocation23 + $0x30] sm:$0xff] }
 0x8af   : > { %v1681_v40 = vpop.xlane.xlu1 %1680  ;;  %1994 = vmatpush.bf16.msrb.mxu0 %v2809_v39 }
 0x8b0   : > { %v1683_v41 = vmul.f32 %v1681_v40, %v3956_v0  ;;  %v2817_v40 = vld [vmem:[#allocation23 + $0x70] sm:$0xff] }
 0x8b2   : > { %v4007_v48 = vsub.f32 %v1677_v36, %v1683_v41  ;;  %v2818_v36 = vld [vmem:[#allocation23 + $0x78] sm:$0xff] }
 0x8b3   : > { %2007 = vmatpush.bf16.msrb.mxu1 %v2818_v36  ;;  %1995 = vmatpush.bf16.msrb.mxu0 %v2808_v42 }
 0x8b4   : > { %v1687_v6 = vmul.f32 %v4007_v48, %v4007_v48 }
 0x8b6   : > { %1690 = vadd.xlane.f32.xlu0 %v1687_v6 }
 0x8b7   : > { %2008 = vmatpush.bf16.msrb.mxu1 %v2817_v40  ;;  %1996 = vmatpush.bf16.msrb.mxu0 %v2807_v46 }
 0x8bb   : > { %2009 = vmatpush.bf16.msrb.mxu1 %v2816_v43  ;;  %1997 = vmatpush.bf16.msrb.mxu0 %v2806_v10 }
 0x8bf   : > { %2010 = vmatpush.bf16.msrb.mxu1 %v2815_v49 }
 0x8c3   : > { %2011 = vmatpush.bf16.msrb.mxu1 %v2814_v11 }
 0x8c7   : > { %2012 = vmatpush.bf16.msrb.mxu1 %v2813_v12 }
 0x8cb   : > { %2013 = vmatpush.bf16.msrb.mxu1 %v2812_v14 }
 0x8cf   : > { %2014 = vmatpush.bf16.msrb.mxu1 %v2811_v15 }
 0x921   : > { %v1689_v30 = vpop.xlane.xlu2 %1688 }
 0x922   : > { %v1692_v33 = vmul.f32 %v1689_v30, %v3956_v0 }
 0x924   : > { %v1694_v35 = vadd.f32 1e-05, %v1692_v33 }
 0x926   : > { %3030 = vrsqrt.f32 %v1694_v35  ;;  %vm1702_vm13 = vweird.f32 %v1694_v35 }
 0x929   : > { %v1691_v37 = vpop.xlane.xlu0 %1690 }
 0x92a   : > { %v1693_v38 = vmul.f32 %v1691_v37, %v3956_v0 }
 0x92c   : > { %v3031_v41 = vpop.eup %3030  ;;  %v1695_v6 = vadd.f32 1e-05, %v1693_v38 }
 0x92d   : > { %v1697_v7 = vmul.f32 %v3031_v41, %v1694_v35  ;;  %vm1703_vm12 = vweird.f32 %v3031_v41 }
 0x92e   : > { %3032 = vrsqrt.f32 %v1695_v6  ;;  %vm1704_vm14 = vmor %vm1702_vm13, %vm1703_vm12  ;;  %vm1712_vm0 = vweird.f32 %v1695_v6 }
 0x92f   : > { %v1698_v44 = vmul.f32 %v3031_v41, %v1697_v7 }
 0x931   : > { %v1699_v45 = vmul.f32 0.5, %v1698_v44 }
 0x933   : > { %v1700_v52 = vsub.f32 1.5, %v1699_v45 }
 0x934   : > { %v3033_v53 = vpop.eup %3032 }
 0x935   : > { %v1701_v54 = vmul.f32 %v3031_v41, %v1700_v52  ;;  %v1707_v55 = vmul.f32 %v3033_v53, %v1695_v6  ;;  %vm1713_vm15 = vweird.f32 %v3033_v53 }
 0x936   : > { %vm1714_vm1 = vmor %vm1712_vm0, %vm1713_vm15 }
 0x937   : > { %v1708_v56 = vmul.f32 %v3033_v53, %v1707_v55  ;;  %v1705_v57 = vsel %vm1704_vm14, %v3031_v41, %v1701_v54 }
 0x938   : > { %v1716_v60 = vmul.f32 %v1705_v57, %v4002_v47  ;;  %v2805_v47 = vld [vmem:[#allocation23 + $0x10] sm:$0xff] }
 0x939   : > { %v1709_v50 = vmul.f32 0.5, %v1708_v56  ;;  %1998 = vmatpush.bf16.msrb.mxu0 %v2805_v47 }
 0x93a   : > { %v1719_v3 = vmul.f32 %v1718_v61, %v1716_v60 }
 0x93b   : > { %v1710_v58 = vsub.f32 1.5, %v1709_v50 }
 0x93c   : > { %v1722_v51 = vadd.f32 %v1721_v4, %v1719_v3 }
 0x93d   : > { %v1711_v62 = vmul.f32 %v3033_v53, %v1710_v58  ;;  %1999 = vmatpush.bf16.msrb.mxu0 %v2804_v13 }
 0x93f   : > { %v1715_v63 = vsel %vm1714_vm1, %v3033_v53, %v1711_v62 }
 0x940   : > { %v1717_v2 = vmul.f32 %v1715_v63, %v4007_v48  ;;  %v2803_v48 = vld [vmem:[#allocation23] sm:$0xff] }
 0x941   : > { %2000 = vmatpush.bf16.msrb.mxu0 %v2803_v48 }
 0x942   : > { %v1720_v5 = vmul.f32 %v1718_v61, %v1717_v2 }
 0x944   : > { %v1723_v8 = vadd.f32 %v1721_v4, %v1720_v5 }
 0x946   : > { %v1724_v9 = vpack.c.bf16 %v1723_v8, %v1722_v51 }
 0x948   : > { %1835 = vmatmul.bf16.vlgmr.msra.gmra.mxu2 %v1724_v9  ;;  %1849 = vmatmul.bf16.vlgmr.msra.gmra.mxu3 %v1724_v9 }
 0x9cb   : > { %v1836_v17 = vpop.f32.mrf.mxu2  ;;  %v1850_v18 = vpop.f32.mrf.mxu3 }
 0x9cc   : > { %v1837_v21 = vadd.f32 %v1836_v17, %v1743_v19  ;;  %v1851_v22 = vadd.f32 %v1850_v18, %v1744_v20 }
 0x9ce   : > { %v1855_v27 = vmax.f32 %v1837_v21, 0.0  ;;  %v1856_v29 = vmax.f32 %v1851_v22, 0.0 }
 0x9d3   : > { %v1838_v23 = vpop.f32.mrf.mxu2  ;;  %v1852_v24 = vpop.f32.mrf.mxu3 }
 0x9d4   : > { %v1839_v25 = vadd.f32 %v1838_v23, %v1743_v19  ;;  %v1853_v26 = vadd.f32 %v1852_v24, %v1744_v20 }
 0x9d6   : > { %v1857_v30 = vmax.f32 %v1839_v25, 0.0  ;;  %v1858_v31 = vmax.f32 %v1853_v26, 0.0 }
 0x9d8   : > { %v1859_v32 = vpack.c.bf16 %v1857_v30, %v1855_v27  ;;  %v1860_v33 = vpack.c.bf16 %v1858_v31, %v1856_v29 }
 0x9da   : > { %2001 = vmatmul.bf16.vlgmr.msrb.gmra.mxu0 %v1859_v32  ;;  %2015 = vmatmul.bf16.vlgmr.msrb.gmra.mxu1 %v1860_v33 }
 0xa57   : > { %v2002_v35 = vpop.f32.mrf.mxu0  ;;  %v2016_v28 = vpop.f32.mrf.mxu1 }
 0xa58   : > { %v2003_v36 = vadd.f32 %v3007_v34, %v2002_v35 }
 0xa5a   : > { %v2017_v37 = vadd.f32 %v2016_v28, %v2003_v36 }
 0xa5c   : > { %v2021_v38 = vadd.f32 %v2017_v37, %v1722_v51  ;;  %v2063_v51 = vperm.slane %v3977_v59, 2 }
 0xa5e   : > { %2023 = vadd.xlane.f32.xlu1 %v2021_v38 }
 0xa5f   : > { %v2004_v39 = vpop.f32.mrf.mxu0  ;;  %v2018_v41 = vpop.f32.mrf.mxu1 }
 0xa60   : > { %v2005_v40 = vadd.f32 %v3007_v34, %v2004_v39 }
 0xa62   : > { %v2019_v6 = vadd.f32 %v2018_v41, %v2005_v40 }
 0xa64   : > { %v2022_v7 = vadd.f32 %v2019_v6, %v1723_v8 }
 0xa66   : > { %2025 = vadd.xlane.f32.xlu2 %v2022_v7 }
 0xad1   : > { %v2024_v42 = vpop.xlane.xlu1 %2023 }
 0xad2   : > { %v2027_v43 = vmul.f32 %v2024_v42, %v3956_v0 }
 0xad4   : > { %v2029_v44 = vsub.f32 %v2021_v38, %v2027_v43 }
 0xad6   : > { %v2031_v45 = vmul.f32 %v2029_v44, %v2029_v44 }
 0xad8   : > { %2033 = vadd.xlane.f32.xlu0 %v2031_v45 }
 0xad9   : > { %v2026_v46 = vpop.xlane.xlu2 %2025 }
 0xada   : > { %v2028_v49 = vmul.f32 %v2026_v46, %v3956_v0 }
 0xadc   : > { %v2030_v52 = vsub.f32 %v2022_v7, %v2028_v49 }
 0xade   : > { %v2032_v53 = vmul.f32 %v2030_v52, %v2030_v52 }
 0xae0   : > { %2035 = vadd.xlane.f32.xlu1 %v2032_v53 }
 0xb4b   : > { %v2034_v54 = vpop.xlane.xlu0 %2033 }
 0xb4c   : > { %v2037_v55 = vmul.f32 %v2034_v54, %v3956_v0 }
 0xb4e   : > { %v2039_v56 = vadd.f32 1e-05, %v2037_v55 }
 0xb50   : > { %3034 = vrsqrt.f32 %v2039_v56  ;;  %vm2047_vm3 = vweird.f32 %v2039_v56 }
 0xb53   : > { %v2036_v57 = vpop.xlane.xlu1 %2035 }
 0xb54   : > { %v2038_v50 = vmul.f32 %v2036_v57, %v3956_v0  ;;  %v2066_v0 = vperm.slane %v3984_v1, 2 }
 0xb56   : > { %v3035_v58 = vpop.eup %3034  ;;  %v2040_v60 = vadd.f32 1e-05, %v2038_v50 }
 0xb57   : > { %v2042_v61 = vmul.f32 %v3035_v58, %v2039_v56  ;;  %vm2048_vm2 = vweird.f32 %v3035_v58 }
 0xb58   : > { %3036 = vrsqrt.f32 %v2040_v60  ;;  %vm2049_vm4 = vmor %vm2047_vm3, %vm2048_vm2  ;;  %vm2057_vm6 = vweird.f32 %v2040_v60 }
 0xb59   : > { %v2043_v62 = vmul.f32 %v3035_v58, %v2042_v61 }
 0xb5b   : > { %v2044_v63 = vmul.f32 0.5, %v2043_v62 }
 0xb5d   : > { %v2045_v2 = vsub.f32 1.5, %v2044_v63 }
 0xb5e   : > { %v3037_v3 = vpop.eup %3036 }
 0xb5f   : > { %v2046_v4 = vmul.f32 %v3035_v58, %v2045_v2  ;;  %v2052_v5 = vmul.f32 %v3037_v3, %v2040_v60  ;;  %vm2058_vm5 = vweird.f32 %v3037_v3 }
 0xb60   : > { %vm2059_vm7 = vmor %vm2057_vm6, %vm2058_vm5 }
 0xb61   : > { %v2050_v8 = vsel %vm2049_vm4, %v3035_v58, %v2046_v4  ;;  %v2053_v9 = vmul.f32 %v3037_v3, %v2052_v5 }
 0xb62   : > { %v2061_v10 = vmul.f32 %v2050_v8, %v2029_v44 }
 0xb63   : > { %v2054_v11 = vmul.f32 0.5, %v2053_v9 }
 0xb64   : > { %v2064_v47 = vmul.f32 %v2063_v51, %v2061_v10 }
 0xb65   : > { %v2055_v12 = vsub.f32 1.5, %v2054_v11 }
 0xb66   : > { %v2067_v13 = vadd.f32 %v2066_v0, %v2064_v47 }
 0xb67   : > { %v2056_v14 = vmul.f32 %v3037_v3, %v2055_v12 }
 0xb68   : > { %2069 = vst [vmem:[%s825_s15] sm:$0xff] %v2067_v13 }
 0xb69   : > { %v2060_v59 = vsel %vm2059_vm7, %v3037_v3, %v2056_v14 }
 0xb6a   : > { %v2062_v1 = vmul.f32 %v2060_v59, %v2030_v52 }
 0xb6c   : > { %v2065_v48 = vmul.f32 %v2063_v51, %v2062_v1 }
 0xb6e   : > { %v2068_v15 = vadd.f32 %v2066_v0, %v2065_v48 }
 0xb70   : > { %2070 = vst [vmem:[%s825_s15 + $0x8] sm:$0xff] %v2068_v15 }
 0xb71   : > { %3485 = shalt.err (!%p3482_p8)
}
 0xb72   : > { %s3577_s11 = smov 128   ;;  %s3578_s12 = smov 8  }
 0xb73   : > { %2875 = dma.vmem_to_hbm [thread:$0]  (%p3821_p4), %s2085_s8, 256, %s2087_s9, %s2072_s21, %s3577_s11, %s3577_s11, %s3578_s12  }
 0xb74 PF: > { %s2101_s6 = sand.u32 1, %s3544_s27   ;;  %p4138_p10 = scmp.ge.s32.totalorder %s3556_s30, 2 }
 0xb75   : > { %s2102_s26 = scalar_lea.sflag [#allocation4], %s2101_s6 }
 0xb76   : > { %p2922_p13 = pnand %p4138_p10, %p3825_p6 }
 0xb78   : > { %p2923_p11 = pneg %p2922_p13 }
 0xb7a   : > { %3539 = dma.done.wait (%p2923_p11), %s2102_s26, 256  }
 0xb7b   : > { %3541 = vsyncadd (%p2923_p11), %s2102_s26, 4294967040  ;;  %p40_p0 = scmp.ge.s32.totalorder %s3793_s1, 4   ;;  %s4139_s27 = smov %s3548_s28 }
 0xb7c   : > { %s4140_s28 = smov %s3552_s29  ;;  %s4141_s29 = smov %s3804_s23 }
 0xb7d   : > { %s4142_s30 = smov %s3793_s1  ;;  %42 = sbr.rel (!%p40_p0) target bundleno = 32 (0x20), region = 198 }
 0xb82   :  { %2108 = vsyncpa [#allocation3], 1 }
 0xb83   :  { %2110 = vsyncpa [#allocation3 + $0x1], 1 }
 0xb84   :  { %2111 = vsyncpa [#allocation6], 1 }
 0xb85   :  { %2113 = vsyncpa [#allocation6 + $0x1], 1 }
 0xb86   :  { %2114 = vsyncpa [#allocation9], 1 }
 0xb87   :  { %2115 = vsyncpa [#allocation12], 1 }
 0xb88   :  { %2116 = vsyncpa [#allocation15], 1 }
 0xb89   :  { %2117 = vsyncpa [#allocation18], 1 }
 0xb8a   :  { %2118 = vsyncpa [#allocation21], 1 }
 0xb8b   :  { %2119 = vsyncpa [#allocation24], 1 }
 0xb8c   :  { %2120 = vsyncpa [#allocation4], 1 }
 0xb8d   :  { %2122 = vsyncpa [#allocation4 + $0x1], 1 }

</bundles_post_ra>
